<compile_context>
chip_gen: v5e
topology: v5e:2x2
jax: 0.10.0
libtpu: 0.0.40
codegen_flags: <defaults>
</compile_context>

<pallas_src>
import functools

import numpy as np
import jax
import jax.numpy as jnp
from jax import lax
from jax.experimental import pallas as pl
from jax.experimental.pallas import tpu as pltpu

EPS = 1e-5
LANE = 128                         # keep channel (lane) dim dense
VMEM_LIMIT = 48 * 1024 * 1024      # explicit budget; fits v7x's 64 MiB VMEM
_TILE_BUDGET = 8 * 1024 * 1024     # per-call working-set target (headroom for
                                   # double-buffered DMA on all generations)


def _round_up(x, m):
    return ((x + m - 1) // m) * m


def _row_tile(rows, c_in, c_out):
    """Largest sublane-aligned row tile dividing `rows` that fits the budget."""
    for tr in (2048, 1024, 512, 256, 128, 64, 32, 16, 8):
        if rows % tr == 0 and tr * (c_in + c_out) * 4 * 2 <= _TILE_BUDGET:
            return tr
    return rows                    # single tile (block == full array)


def _compiler_params():
    return pltpu.CompilerParams(dimension_semantics=("parallel",),
                                vmem_limit_bytes=VMEM_LIMIT)


# --------------------------------------------------------------------------
# kernels
# --------------------------------------------------------------------------
def _pw_conv_kernel(h_ref, sc_ref, sh_ref, w_ref, o_ref, st_ref, *,
                    apply_bn_relu):
    """(optional BN+ReLU) -> 1x1 conv (channel matmul) + one-pass partial stats."""
    h = h_ref[...].astype(jnp.float32)
    if apply_bn_relu:
        h = jnp.maximum(h * sc_ref[...] + sh_ref[...], 0.0)
    y = jnp.dot(h.astype(w_ref.dtype), w_ref[...],
                preferred_element_type=jnp.float32)
    o_ref[...] = y.astype(o_ref.dtype)
    s = jnp.sum(y, axis=0, keepdims=True)
    ss = jnp.sum(y * y, axis=0, keepdims=True)
    st_ref[...] = jnp.concatenate([s, ss], axis=0).reshape(1, 2, -1)


def _conv3x3_kernel(h_ref, sc_ref, sh_ref, w_ref, o_ref, st_ref,
                    pad_ref, acc_ref):
    """BN1+ReLU -> 3x3 conv (stride 1, pad 1) for one image, as 3 deep-K matmuls."""
    _, H, W, C = h_ref.shape
    Co = o_ref.shape[3]

    a = h_ref[0].astype(jnp.float32)
    a = jnp.maximum(a * sc_ref[...].reshape(1, 1, C)
                    + sh_ref[...].reshape(1, 1, C), 0.0)

    # Zero only the halo ring of the padded scratch; interior is overwritten.
    zr = jnp.zeros((1, W + 2, C), pad_ref.dtype)
    zc = jnp.zeros((H + 2, 1, C), pad_ref.dtype)
    pad_ref[0:1, :, :] = zr
    pad_ref[H + 1:H + 2, :, :] = zr
    pad_ref[:, 0:1, :] = zc
    pad_ref[:, W + 1:W + 2, :] = zc
    pad_ref[1:H + 1, 1:W + 1, :] = a.astype(pad_ref.dtype)

    # Three matmuls with K = 3*C: per ky, the 3 kx-shifted patches are
    # concatenated along channels; f32 accumulation in a VMEM scratch.
    for ky in range(3):
        win = pad_ref[ky:ky + H, :, :]                       # (H, W+2, C)
        patch = jnp.concatenate(
            [win[:, 0:W, :], win[:, 1:W + 1, :], win[:, 2:W + 2, :]], axis=-1)
        contrib = jnp.dot(patch.reshape(H * W, 3 * C), w_ref[ky],
                          preferred_element_type=jnp.float32)
        if ky == 0:
            acc_ref[...] = contrib
        else:
            acc_ref[...] += contrib

    y = acc_ref[...]
    o_ref[...] = y.reshape(1, H, W, Co).astype(o_ref.dtype)
    s = jnp.sum(y, axis=0, keepdims=True)
    ss = jnp.sum(y * y, axis=0, keepdims=True)
    st_ref[...] = jnp.concatenate([s, ss], axis=0).reshape(1, 2, -1)


def _bn_add_relu_kernel(h_ref, sc_ref, sh_ref, x_ref, o_ref):
    y = h_ref[...].astype(jnp.float32) * sc_ref[...] + sh_ref[...]
    o_ref[...] = jnp.maximum(y + x_ref[...].astype(jnp.float32),
                             0.0).astype(o_ref.dtype)


# --------------------------------------------------------------------------
# stage wrappers (pallas_call with grids / BlockSpecs)
# --------------------------------------------------------------------------
def _pw_stage(h_in, scale, shift, w, *, apply_bn_relu, out_dtype):
    rows, c_in = h_in.shape
    c_out = w.shape[1]
    tr = _row_tile(rows, c_in, c_out)
    num_tiles = rows // tr
    kernel = functools.partial(_pw_conv_kernel, apply_bn_relu=apply_bn_relu)
    return pl.pallas_call(
        kernel,
        grid=(num_tiles,),
        in_specs=[
            pl.BlockSpec((tr, c_in), lambda i: (i, 0)),
            pl.BlockSpec((1, c_in), lambda i: (0, 0)),
            pl.BlockSpec((1, c_in), lambda i: (0, 0)),
            pl.BlockSpec((c_in, c_out), lambda i: (0, 0)),
        ],
        out_specs=(
            pl.BlockSpec((tr, c_out), lambda i: (i, 0)),
            pl.BlockSpec((1, 2, c_out), lambda i: (i, 0, 0)),
        ),
        out_shape=(
            jax.ShapeDtypeStruct((rows, c_out), out_dtype),
            jax.ShapeDtypeStruct((num_tiles, 2, c_out), jnp.float32),
        ),
        compiler_params=_compiler_params(),
    )(h_in, scale, shift, w)


def _conv3x3_stage(h1, scale, shift, w2r, *, out_dtype, compute_dtype):
    n, h, w, c = h1.shape
    co = w2r.shape[2]
    return pl.pallas_call(
        _conv3x3_kernel,
        grid=(n,),
        in_specs=[
            pl.BlockSpec((1, h, w, c), lambda i: (i, 0, 0, 0)),
            pl.BlockSpec((1, c), lambda i: (0, 0)),
            pl.BlockSpec((1, c), lambda i: (0, 0)),
            pl.BlockSpec((3, 3 * c, co), lambda i: (0, 0, 0)),
        ],
        out_specs=(
            pl.BlockSpec((1, h, w, co), lambda i: (i, 0, 0, 0)),
            pl.BlockSpec((1, 2, co), lambda i: (i, 0, 0)),
        ),
        out_shape=(
            jax.ShapeDtypeStruct((n, h, w, co), out_dtype),
            jax.ShapeDtypeStruct((n, 2, co), jnp.float32),
        ),
        scratch_shapes=[
            pltpu.VMEM((h + 2, w + 2, c), compute_dtype),   # zero-halo buffer
            pltpu.VMEM((h * w, co), jnp.float32),           # f32 accumulator
        ],
        compiler_params=_compiler_params(),
    )(h1, scale, shift, w2r)


def _bn_add_relu_stage(h3, scale, shift, x_id):
    rows, c = h3.shape
    tr = _row_tile(rows, c, c)
    return pl.pallas_call(
        _bn_add_relu_kernel,
        grid=(rows // tr,),
        in_specs=[
            pl.BlockSpec((tr, c), lambda i: (i, 0)),
            pl.BlockSpec((1, c), lambda i: (0, 0)),
            pl.BlockSpec((1, c), lambda i: (0, 0)),
            pl.BlockSpec((tr, c), lambda i: (i, 0)),
        ],
        out_specs=pl.BlockSpec((tr, c), lambda i: (i, 0)),
        out_shape=jax.ShapeDtypeStruct((rows, c), jnp.float32),
        compiler_params=_compiler_params(),
    )(h3, scale, shift, x_id)


def _finalize_bn(stats, gamma, beta, count):
    """Combine per-tile partial stats -> BN scale/shift (O(C), plain XLA)."""
    s = jnp.sum(stats[:, 0, :], axis=0, keepdims=True)
    ss = jnp.sum(stats[:, 1, :], axis=0, keepdims=True)
    mean = s / count
    var = jnp.maximum(ss / count - mean * mean, 0.0)      # one-pass, f32
    scale = gamma * lax.rsqrt(var + EPS)
    shift = beta - mean * scale
    return scale, shift


def _pad_last(a, c):
    p = c - a.shape[-1]
    if p == 0:
        return a
    return jnp.pad(a, [(0, 0)] * (a.ndim - 1) + [(0, p)])


def _pad_mat(w, r, c, dtype):
    out = jnp.zeros((r, c), dtype)
    return out.at[: w.shape[0], : w.shape[1]].set(w.astype(dtype))


# --------------------------------------------------------------------------
# full Bottleneck forward
# --------------------------------------------------------------------------
def bottleneck_forward(x_nchw, params, compute_dtype=jnp.bfloat16):
    """Bottleneck forward (stride=1, downsample=None, groups=1, base_width=64),
    training-mode BatchNorm (batch statistics).

    params = (w1 (Cin,Cw), g1 (Cw,), b1 (Cw,),
              w2 (3,3,Cw,Cw) HWIO, g2 (Cw,), b2 (Cw,),
              w3 (Cw,Cout), g3 (Cout,), b3 (Cout,))
    """
    w1, g1, b1, w2, g2, b2, w3, g3, b3 = params

    # NCHW -> NHWC at the module boundary (lane dim = channels).
    # TODO(synk): adopt NHWC end-to-end upstream so these two transposes (an
    #             extra HBM round-trip each) disappear.
    x = jnp.transpose(x_nchw, (0, 2, 3, 1)).astype(jnp.float32)
    n, h, w_sp, c_in = x.shape
    c_w = w1.shape[1]
    c_out = w3.shape[1]
    assert c_in == c_out, "downsample=None requires inplanes == planes*expansion"

    cin_p = _round_up(c_in, LANE)
    cw_p = _round_up(c_w, LANE)
    cout_p = _round_up(c_out, LANE)
    rows = n * h * w_sp

    # Lane-dense zero padding of channels + low-precision matmul operands.
    xp = _pad_last(x, cin_p)
    w1p = _pad_mat(w1, cin_p, cw_p, compute_dtype)
    w3p = _pad_mat(w3, cw_p, cout_p, compute_dtype)
    w2p = jnp.zeros((3, 3, cw_p, cw_p), compute_dtype)
    w2p = w2p.at[:, :, :c_w, :c_w].set(w2.astype(compute_dtype))
    w2r = w2p.reshape(3, 3 * cw_p, cw_p)      # per-ky (3*C, C) for deep-K matmuls

    g1p = _pad_last(g1.reshape(1, -1).astype(jnp.float32), cw_p)
    b1p = _pad_last(b1.reshape(1, -1).astype(jnp.float32), cw_p)
    g2p = _pad_last(g2.reshape(1, -1).astype(jnp.float32), cw_p)
    b2p = _pad_last(b2.reshape(1, -1).astype(jnp.float32), cw_p)
    g3p = _pad_last(g3.reshape(1, -1).astype(jnp.float32), cout_p)
    b3p = _pad_last(b3.reshape(1, -1).astype(jnp.float32), cout_p)

    ones = jnp.ones((1, cin_p), jnp.float32)
    zeros = jnp.zeros((1, cin_p), jnp.float32)

    # stage 1: conv1 (1x1) + bn1 partial stats
    h1, s1 = _pw_stage(xp.reshape(rows, cin_p), ones, zeros, w1p,
                       apply_bn_relu=False, out_dtype=compute_dtype)
    sc1, sh1 = _finalize_bn(s1, g1p, b1p, rows)

    # stage 2: bn1 + relu -> conv2 (3x3) + bn2 partial stats
    h2, s2 = _conv3x3_stage(h1.reshape(n, h, w_sp, cw_p), sc1, sh1, w2r,
                            out_dtype=compute_dtype, compute_dtype=compute_dtype)
    sc2, sh2 = _finalize_bn(s2, g2p, b2p, rows)

    # stage 3: bn2 + relu -> conv3 (1x1) + bn3 partial stats
    h3, s3 = _pw_stage(h2.reshape(rows, cw_p), sc2, sh2, w3p,
                       apply_bn_relu=True, out_dtype=compute_dtype)
    sc3, sh3 = _finalize_bn(s3, g3p, b3p, rows)

    # stage 4: bn3 + residual add + relu
    y = _bn_add_relu_stage(h3, sc3, sh3, xp.reshape(rows, cout_p))

    out = y.reshape(n, h, w_sp, cout_p)[..., :c_out]
    return jnp.transpose(out, (0, 3, 1, 2))


# --------------------------------------------------------------------------
# pure-JAX reference (f32, training-mode BatchNorm)
# --------------------------------------------------------------------------
def _bn_ref(h, gamma, beta):
    mean = jnp.mean(h, axis=(0, 1, 2), keepdims=True)
    var = jnp.mean((h - mean) ** 2, axis=(0, 1, 2), keepdims=True)
    return (h - mean) * lax.rsqrt(var + EPS) * gamma.reshape(1, 1, 1, -1) \
        + beta.reshape(1, 1, 1, -1)


def bottleneck_reference(x_nchw, params):
    w1, g1, b1, w2, g2, b2, w3, g3, b3 = params
    x = jnp.transpose(x_nchw, (0, 2, 3, 1)).astype(jnp.float32)
    dn = ("NHWC", "HWIO", "NHWC")
    h = lax.conv_general_dilated(x, w1.reshape(1, 1, *w1.shape), (1, 1), "VALID",
                                 dimension_numbers=dn)
    h = jnp.maximum(_bn_ref(h, g1, b1), 0.0)
    h = lax.conv_general_dilated(h, w2, (1, 1), ((1, 1), (1, 1)),
                                 dimension_numbers=dn)
    h = jnp.maximum(_bn_ref(h, g2, b2), 0.0)
    h = lax.conv_general_dilated(h, w3.reshape(1, 1, *w3.shape), (1, 1), "VALID",
                                 dimension_numbers=dn)
    h = _bn_ref(h, g3, b3)
    out = jnp.maximum(h + x, 0.0)
    return jnp.transpose(out, (0, 3, 1, 2))


# --------------------------------------------------------------------------
if __name__ == "__main__":
    # Shapes consistent with the module: inplanes == planes * expansion so the
    # identity add is valid (downsample=None, stride=1).
    N, inplanes, H, W = 2, 32, 8, 8
    planes = 8
    width = planes                 # base_width=64, groups=1
    cout = planes * 4              # == inplanes

    key = jax.random.PRNGKey(0)
    k0, k1, k2, k3 = jax.random.split(key, 4)
    x = jax.random.normal(k0, (N, inplanes, H, W), jnp.float32)

    # Synthetic deterministic parameters (conv1x1 as (Cin,Cout), conv3x3 HWIO).
    w1 = jax.random.normal(k1, (inplanes, width), jnp.float32) * 0.1
    w2 = jax.random.normal(k2, (3, 3, width, width), jnp.float32) * 0.1
    w3 = jax.random.normal(k3, (width, cout), jnp.float32) * 0.1
    g1, b1 = jnp.ones((width,), jnp.float32), jnp.zeros((width,), jnp.float32)
    g2, b2 = jnp.ones((width,), jnp.float32), jnp.zeros((width,), jnp.float32)
    g3, b3 = jnp.ones((cout,), jnp.float32), jnp.zeros((cout,), jnp.float32)
    params = (w1, g1, b1, w2, g2, b2, w3, g3, b3)

    fwd = jax.jit(bottleneck_forward, static_argnames=("compute_dtype",))
    ref = jax.block_until_ready(bottleneck_reference(x, params))

    # Recommended production path: bf16 MXU operands, f32 accumulation.
    # Tolerance is loose because the toy widths (K = 8 real channels) give very
    # little error averaging for bf16 operands.
    out = jax.block_until_ready(fwd(x, params, compute_dtype=jnp.bfloat16))
    np.testing.assert_allclose(np.asarray(out), np.asarray(ref),
                               rtol=5e-2, atol=5e-2)

    # f32 operands: tight structural check of the tiled kernels + BN scheme.
    out_f32 = jax.block_until_ready(fwd(x, params, compute_dtype=jnp.float32))
    np.testing.assert_allclose(np.asarray(out_f32), np.asarray(ref),
                               rtol=5e-4, atol=5e-4)

    assert out.shape == (N, cout, H, W)
    print("KERNEL_OK")
</pallas_src>

<mosaic_0001>
module attributes {stable_mosaic.version = 11 : i64} {
  func.func @_pw_conv_kernel(%arg0: i32, %arg1: memref<128x128xf32, #tpu.memory_space<vmem>>, %arg2: memref<1x128xf32, #tpu.memory_space<vmem>>, %arg3: memref<1x128xf32, #tpu.memory_space<vmem>>, %arg4: memref<128x128xbf16, #tpu.memory_space<vmem>>, %arg5: memref<128x128xbf16, #tpu.memory_space<vmem>>, %arg6: memref<1x2x128xf32, #tpu.memory_space<vmem>>) attributes {dimension_semantics = [#tpu.dimension_semantics<parallel>], iteration_bounds = array<i64: 1>, scalar_prefetch = 0 : i64, scratch_operands = 0 : i64, tpu.core_type = #tpu.core_type<tc>, window_params = [{transform_indices = @transform_0, window_bounds = array<i64: 128, 128>}, {pipeline_mode = #tpu.pipeline_mode<synchronous>, transform_indices = @transform_1, window_bounds = array<i64: 1, 128>}, {pipeline_mode = #tpu.pipeline_mode<synchronous>, transform_indices = @transform_2, window_bounds = array<i64: 1, 128>}, {pipeline_mode = #tpu.pipeline_mode<synchronous>, transform_indices = @transform_3, window_bounds = array<i64: 128, 128>}, {transform_indices = @transform_4, window_bounds = array<i64: 128, 128>}, {transform_indices = @transform_5, window_bounds = array<i64: 1, 2, 128>}]} {
    %c0 = arith.constant 0 : index
    %c0_0 = arith.constant 0 : index
    %0 = vector.load %arg1[%c0, %c0_0] : memref<128x128xf32, #tpu.memory_space<vmem>>, vector<128x128xf32>
    %1 = arith.truncf %0 : vector<128x128xf32> to vector<128x128xbf16>
    %c0_1 = arith.constant 0 : index
    %c0_2 = arith.constant 0 : index
    %2 = vector.load %arg4[%c0_1, %c0_2] : memref<128x128xbf16, #tpu.memory_space<vmem>>, vector<128x128xbf16>
    %cst = arith.constant dense<0.000000e+00> : vector<128x128xf32>
    %3 = tpu.matmul %1, %2, %cst {dimension_numbers = #tpu.dot_dimension_numbers<[1], [0], [0], [1], [0, 0, 1, 1], [], []>} : vector<128x128xbf16>, vector<128x128xbf16>, vector<128x128xf32> -> vector<128x128xf32>
    %4 = arith.truncf %3 : vector<128x128xf32> to vector<128x128xbf16>
    %c0_3 = arith.constant 0 : index
    %c0_4 = arith.constant 0 : index
    %5 = vector.load %arg5[%c0_3, %c0_4] : memref<128x128xbf16, #tpu.memory_space<vmem>>, vector<128x128xbf16>
    tpu.vector_store %arg5[%c0_3, %c0_4], %4 {strides = array<i32>} : memref<128x128xbf16, #tpu.memory_space<vmem>>, vector<128x128xbf16>,
    %cst_5 = arith.constant dense<0.000000e+00> : vector<128xf32>
    %6 = vector.multi_reduction <add>, %3, %cst_5 [0] : vector<128x128xf32> to vector<128xf32>
    %7 = vector.shape_cast %6 : vector<128xf32> to vector<1x128xf32>
    %8 = arith.mulf %3, %3 : vector<128x128xf32>
    %cst_6 = arith.constant dense<0.000000e+00> : vector<128xf32>
    %9 = vector.multi_reduction <add>, %8, %cst_6 [0] : vector<128x128xf32> to vector<128xf32>
    %10 = vector.shape_cast %9 : vector<128xf32> to vector<1x128xf32>
    %11 = tpu.concatenate %7, %10 in 0 : vector<1x128xf32>, vector<1x128xf32> -> vector<2x128xf32>
    %12 = vector.shape_cast %11 : vector<2x128xf32> to vector<1x2x128xf32>
    %c0_7 = arith.constant 0 : index
    %c0_8 = arith.constant 0 : index
    %c0_9 = arith.constant 0 : index
    %13 = vector.load %arg6[%c0_7, %c0_8, %c0_9] : memref<1x2x128xf32, #tpu.memory_space<vmem>>, vector<1x2x128xf32>
    tpu.vector_store %arg6[%c0_7, %c0_8, %c0_9], %12 {strides = array<i32>} : memref<1x2x128xf32, #tpu.memory_space<vmem>>, vector<1x2x128xf32>,
    return
  }
  func.func @transform_0(%arg0: i32) -> (i32, i32) {
    %c0_i32 = arith.constant 0 : i32
    %c0_i32_0 = arith.constant 0 : i32
    return %arg0, %c0_i32 : i32, i32
  }
  func.func @transform_1(%arg0: i32) -> (i32, i32) {
    %c0_i32 = arith.constant 0 : i32
    %c0_i32_0 = arith.constant 0 : i32
    %c0_i32_1 = arith.constant 0 : i32
    return %c0_i32, %c0_i32_0 : i32, i32
  }
  func.func @transform_2(%arg0: i32) -> (i32, i32) {
    %c0_i32 = arith.constant 0 : i32
    %c0_i32_0 = arith.constant 0 : i32
    %c0_i32_1 = arith.constant 0 : i32
    return %c0_i32, %c0_i32_0 : i32, i32
  }
  func.func @transform_3(%arg0: i32) -> (i32, i32) {
    %c0_i32 = arith.constant 0 : i32
    %c0_i32_0 = arith.constant 0 : i32
    %c0_i32_1 = arith.constant 0 : i32
    return %c0_i32, %c0_i32_0 : i32, i32
  }
  func.func @transform_4(%arg0: i32) -> (i32, i32) {
    %c0_i32 = arith.constant 0 : i32
    %c0_i32_0 = arith.constant 0 : i32
    return %arg0, %c0_i32 : i32, i32
  }
  func.func @transform_5(%arg0: i32) -> (i32, i32, i32) {
    %c0_i32 = arith.constant 0 : i32
    %c0_i32_0 = arith.constant 0 : i32
    %c0_i32_1 = arith.constant 0 : i32
    return %arg0, %c0_i32, %c0_i32_0 : i32, i32, i32
  }
}

module attributes {stable_mosaic.version = 11 : i64} {
  func.func @_conv3x3_kernel(%arg0: i32, %arg1: memref<1x8x8x128xbf16, #tpu.memory_space<vmem>>, %arg2: memref<1x128xf32, #tpu.memory_space<vmem>>, %arg3: memref<1x128xf32, #tpu.memory_space<vmem>>, %arg4: memref<3x384x128xbf16, #tpu.memory_space<vmem>>, %arg5: memref<1x8x8x128xbf16, #tpu.memory_space<vmem>>, %arg6: memref<1x2x128xf32, #tpu.memory_space<vmem>>, %arg7: memref<10x10x128xbf16, #tpu.memory_space<vmem>>, %arg8: memref<64x128xf32, #tpu.memory_space<vmem>>) attributes {dimension_semantics = [#tpu.dimension_semantics<parallel>], iteration_bounds = array<i64: 2>, scalar_prefetch = 0 : i64, scratch_operands = 2 : i64, tpu.core_type = #tpu.core_type<tc>, window_params = [{transform_indices = @transform_0, window_bounds = array<i64: 1, 8, 8, 128>}, {pipeline_mode = #tpu.pipeline_mode<synchronous>, transform_indices = @transform_1, window_bounds = array<i64: 1, 128>}, {pipeline_mode = #tpu.pipeline_mode<synchronous>, transform_indices = @transform_2, window_bounds = array<i64: 1, 128>}, {pipeline_mode = #tpu.pipeline_mode<synchronous>, transform_indices = @transform_3, window_bounds = array<i64: 3, 384, 128>}, {transform_indices = @transform_4, window_bounds = array<i64: 1, 8, 8, 128>}, {transform_indices = @transform_5, window_bounds = array<i64: 1, 2, 128>}]} {
    %c0 = arith.constant 0 : index
    %c0_0 = arith.constant 0 : index
    %c0_1 = arith.constant 0 : index
    %c0_2 = arith.constant 0 : index
    %0 = vector.load %arg1[%c0, %c0_0, %c0_1, %c0_2] : memref<1x8x8x128xbf16, #tpu.memory_space<vmem>>, vector<1x8x8x128xbf16>
    %1 = vector.shape_cast %0 : vector<1x8x8x128xbf16> to vector<8x8x128xbf16>
    %2 = arith.extf %1 : vector<8x8x128xbf16> to vector<8x8x128xf32>
    %c0_3 = arith.constant 0 : index
    %c0_4 = arith.constant 0 : index
    %3 = vector.load %arg2[%c0_3, %c0_4] : memref<1x128xf32, #tpu.memory_space<vmem>>, vector<1x128xf32>
    %4 = vector.shape_cast %3 : vector<1x128xf32> to vector<1x1x128xf32>
    %5 = vector.broadcast %4 : vector<1x1x128xf32> to vector<8x8x128xf32>
    %6 = arith.mulf %2, %5 : vector<8x8x128xf32>
    %c0_5 = arith.constant 0 : index
    %c0_6 = arith.constant 0 : index
    %7 = vector.load %arg3[%c0_5, %c0_6] : memref<1x128xf32, #tpu.memory_space<vmem>>, vector<1x128xf32>
    %8 = vector.shape_cast %7 : vector<1x128xf32> to vector<1x1x128xf32>
    %9 = vector.broadcast %8 : vector<1x1x128xf32> to vector<8x8x128xf32>
    %10 = arith.addf %6, %9 : vector<8x8x128xf32>
    %cst = arith.constant 0.000000e+00 : f32
    %11 = vector.broadcast %cst : f32 to vector<8x8x128xf32>
    %12 = arith.maximumf %10, %11 : vector<8x8x128xf32>
    %cst_7 = arith.constant 0.000000e+00 : bf16
    %13 = vector.broadcast %cst_7 : bf16 to vector<1x10x128xbf16>
    %cst_8 = arith.constant 0.000000e+00 : bf16
    %14 = vector.broadcast %cst_8 : bf16 to vector<10x1x128xbf16>
    %c0_9 = arith.constant 0 : index
    %c0_10 = arith.constant 0 : index
    %c0_11 = arith.constant 0 : index
    %15 = vector.load %arg7[%c0_9, %c0_10, %c0_11] : memref<10x10x128xbf16, #tpu.memory_space<vmem>>, vector<1x10x128xbf16>
    tpu.vector_store %arg7[%c0_9, %c0_10, %c0_11], %13 {strides = array<i32>} : memref<10x10x128xbf16, #tpu.memory_space<vmem>>, vector<1x10x128xbf16>,
    %c9 = arith.constant 9 : index
    %c0_12 = arith.constant 0 : index
    %c0_13 = arith.constant 0 : index
    %16 = vector.load %arg7[%c9, %c0_12, %c0_13] : memref<10x10x128xbf16, #tpu.memory_space<vmem>>, vector<1x10x128xbf16>
    tpu.vector_store %arg7[%c9, %c0_12, %c0_13], %13 {strides = array<i32>} : memref<10x10x128xbf16, #tpu.memory_space<vmem>>, vector<1x10x128xbf16>,
    %c0_14 = arith.constant 0 : index
    %c0_15 = arith.constant 0 : index
    %c0_16 = arith.constant 0 : index
    %17 = vector.load %arg7[%c0_14, %c0_15, %c0_16] : memref<10x10x128xbf16, #tpu.memory_space<vmem>>, vector<10x1x128xbf16>
    tpu.vector_store %arg7[%c0_14, %c0_15, %c0_16], %14 {strides = array<i32>} : memref<10x10x128xbf16, #tpu.memory_space<vmem>>, vector<10x1x128xbf16>,
    %c0_17 = arith.constant 0 : index
    %c9_18 = arith.constant 9 : index
    %c0_19 = arith.constant 0 : index
    %18 = vector.load %arg7[%c0_17, %c9_18, %c0_19] : memref<10x10x128xbf16, #tpu.memory_space<vmem>>, vector<10x1x128xbf16>
    tpu.vector_store %arg7[%c0_17, %c9_18, %c0_19], %14 {strides = array<i32>} : memref<10x10x128xbf16, #tpu.memory_space<vmem>>, vector<10x1x128xbf16>,
    %19 = arith.truncf %12 : vector<8x8x128xf32> to vector<8x8x128xbf16>
    %c1 = arith.constant 1 : index
    %c1_20 = arith.constant 1 : index
    %c0_21 = arith.constant 0 : index
    %20 = vector.load %arg7[%c1, %c1_20, %c0_21] : memref<10x10x128xbf16, #tpu.memory_space<vmem>>, vector<8x8x128xbf16>
    tpu.vector_store %arg7[%c1, %c1_20, %c0_21], %19 {strides = array<i32>} : memref<10x10x128xbf16, #tpu.memory_space<vmem>>, vector<8x8x128xbf16>,
    %c0_22 = arith.constant 0 : index
    %c0_23 = arith.constant 0 : index
    %c0_24 = arith.constant 0 : index
    %21 = vector.load %arg7[%c0_22, %c0_23, %c0_24] : memref<10x10x128xbf16, #tpu.memory_space<vmem>>, vector<8x10x128xbf16>
    %22 = vector.extract_strided_slice %21 {offsets = [0, 0, 0], sizes = [8, 8, 128], strides = [1, 1, 1]} : vector<8x10x128xbf16> to vector<8x8x128xbf16>
    %23 = vector.extract_strided_slice %21 {offsets = [0, 1, 0], sizes = [8, 8, 128], strides = [1, 1, 1]} : vector<8x10x128xbf16> to vector<8x8x128xbf16>
    %24 = vector.extract_strided_slice %21 {offsets = [0, 2, 0], sizes = [8, 8, 128], strides = [1, 1, 1]} : vector<8x10x128xbf16> to vector<8x8x128xbf16>
    %25 = tpu.concatenate %22, %23, %24 in 2 : vector<8x8x128xbf16>, vector<8x8x128xbf16>, vector<8x8x128xbf16> -> vector<8x8x384xbf16>
    %26 = vector.shape_cast %25 : vector<8x8x384xbf16> to vector<64x384xbf16>
    %c0_25 = arith.constant 0 : index
    %c0_26 = arith.constant 0 : index
    %c0_27 = arith.constant 0 : index
    %27 = vector.load %arg4[%c0_25, %c0_26, %c0_27] : memref<3x384x128xbf16, #tpu.memory_space<vmem>>, vector<1x384x128xbf16>
    %28 = vector.shape_cast %27 : vector<1x384x128xbf16> to vector<384x128xbf16>
    %cst_28 = arith.constant dense<0.000000e+00> : vector<64x128xf32>
    %29 = tpu.matmul %26, %28, %cst_28 {dimension_numbers = #tpu.dot_dimension_numbers<[1], [0], [0], [1], [0, 0, 1, 1], [], []>} : vector<64x384xbf16>, vector<384x128xbf16>, vector<64x128xf32> -> vector<64x128xf32>
    %c0_29 = arith.constant 0 : index
    %c0_30 = arith.constant 0 : index
    %30 = vector.load %arg8[%c0_29, %c0_30] : memref<64x128xf32, #tpu.memory_space<vmem>>, vector<64x128xf32>
    tpu.vector_store %arg8[%c0_29, %c0_30], %29 {strides = array<i32>} : memref<64x128xf32, #tpu.memory_space<vmem>>, vector<64x128xf32>,
    %c1_31 = arith.constant 1 : index
    %c0_32 = arith.constant 0 : index
    %c0_33 = arith.constant 0 : index
    %31 = vector.load %arg7[%c1_31, %c0_32, %c0_33] : memref<10x10x128xbf16, #tpu.memory_space<vmem>>, vector<8x10x128xbf16>
    %32 = vector.extract_strided_slice %31 {offsets = [0, 0, 0], sizes = [8, 8, 128], strides = [1, 1, 1]} : vector<8x10x128xbf16> to vector<8x8x128xbf16>
    %33 = vector.extract_strided_slice %31 {offsets = [0, 1, 0], sizes = [8, 8, 128], strides = [1, 1, 1]} : vector<8x10x128xbf16> to vector<8x8x128xbf16>
    %34 = vector.extract_strided_slice %31 {offsets = [0, 2, 0], sizes = [8, 8, 128], strides = [1, 1, 1]} : vector<8x10x128xbf16> to vector<8x8x128xbf16>
    %35 = tpu.concatenate %32, %33, %34 in 2 : vector<8x8x128xbf16>, vector<8x8x128xbf16>, vector<8x8x128xbf16> -> vector<8x8x384xbf16>
    %36 = vector.shape_cast %35 : vector<8x8x384xbf16> to vector<64x384xbf16>
    %c1_34 = arith.constant 1 : index
    %c0_35 = arith.constant 0 : index
    %c0_36 = arith.constant 0 : index
    %37 = vector.load %arg4[%c1_34, %c0_35, %c0_36] : memref<3x384x128xbf16, #tpu.memory_space<vmem>>, vector<1x384x128xbf16>
    %38 = vector.shape_cast %37 : vector<1x384x128xbf16> to vector<384x128xbf16>
    %cst_37 = arith.constant dense<0.000000e+00> : vector<64x128xf32>
    %39 = tpu.matmul %36, %38, %cst_37 {dimension_numbers = #tpu.dot_dimension_numbers<[1], [0], [0], [1], [0, 0, 1, 1], [], []>} : vector<64x384xbf16>, vector<384x128xbf16>, vector<64x128xf32> -> vector<64x128xf32>
    %c0_38 = arith.constant 0 : index
    %c0_39 = arith.constant 0 : index
    %40 = vector.load %arg8[%c0_38, %c0_39] : memref<64x128xf32, #tpu.memory_space<vmem>>, vector<64x128xf32>
    %41 = arith.addf %40, %39 : vector<64x128xf32>
    %c0_40 = arith.constant 0 : index
    %c0_41 = arith.constant 0 : index
    %42 = vector.load %arg8[%c0_40, %c0_41] : memref<64x128xf32, #tpu.memory_space<vmem>>, vector<64x128xf32>
    tpu.vector_store %arg8[%c0_40, %c0_41], %41 {strides = array<i32>} : memref<64x128xf32, #tpu.memory_space<vmem>>, vector<64x128xf32>,
    %c2 = arith.constant 2 : index
    %c0_42 = arith.constant 0 : index
    %c0_43 = arith.constant 0 : index
    %43 = vector.load %arg7[%c2, %c0_42, %c0_43] : memref<10x10x128xbf16, #tpu.memory_space<vmem>>, vector<8x10x128xbf16>
    %44 = vector.extract_strided_slice %43 {offsets = [0, 0, 0], sizes = [8, 8, 128], strides = [1, 1, 1]} : vector<8x10x128xbf16> to vector<8x8x128xbf16>
    %45 = vector.extract_strided_slice %43 {offsets = [0, 1, 0], sizes = [8, 8, 128], strides = [1, 1, 1]} : vector<8x10x128xbf16> to vector<8x8x128xbf16>
    %46 = vector.extract_strided_slice %43 {offsets = [0, 2, 0], sizes = [8, 8, 128], strides = [1, 1, 1]} : vector<8x10x128xbf16> to vector<8x8x128xbf16>
    %47 = tpu.concatenate %44, %45, %46 in 2 : vector<8x8x128xbf16>, vector<8x8x128xbf16>, vector<8x8x128xbf16> -> vector<8x8x384xbf16>
    %48 = vector.shape_cast %47 : vector<8x8x384xbf16> to vector<64x384xbf16>
    %c2_44 = arith.constant 2 : index
    %c0_45 = arith.constant 0 : index
    %c0_46 = arith.constant 0 : index
    %49 = vector.load %arg4[%c2_44, %c0_45, %c0_46] : memref<3x384x128xbf16, #tpu.memory_space<vmem>>, vector<1x384x128xbf16>
    %50 = vector.shape_cast %49 : vector<1x384x128xbf16> to vector<384x128xbf16>
    %cst_47 = arith.constant dense<0.000000e+00> : vector<64x128xf32>
    %51 = tpu.matmul %48, %50, %cst_47 {dimension_numbers = #tpu.dot_dimension_numbers<[1], [0], [0], [1], [0, 0, 1, 1], [], []>} : vector<64x384xbf16>, vector<384x128xbf16>, vector<64x128xf32> -> vector<64x128xf32>
    %c0_48 = arith.constant 0 : index
    %c0_49 = arith.constant 0 : index
    %52 = vector.load %arg8[%c0_48, %c0_49] : memref<64x128xf32, #tpu.memory_space<vmem>>, vector<64x128xf32>
    %53 = arith.addf %52, %51 : vector<64x128xf32>
    %c0_50 = arith.constant 0 : index
    %c0_51 = arith.constant 0 : index
    %54 = vector.load %arg8[%c0_50, %c0_51] : memref<64x128xf32, #tpu.memory_space<vmem>>, vector<64x128xf32>
    tpu.vector_store %arg8[%c0_50, %c0_51], %53 {strides = array<i32>} : memref<64x128xf32, #tpu.memory_space<vmem>>, vector<64x128xf32>,
    %c0_52 = arith.constant 0 : index
    %c0_53 = arith.constant 0 : index
    %55 = vector.load %arg8[%c0_52, %c0_53] : memref<64x128xf32, #tpu.memory_space<vmem>>, vector<64x128xf32>
    %56 = vector.shape_cast %55 : vector<64x128xf32> to vector<1x8x8x128xf32>
    %57 = arith.truncf %56 : vector<1x8x8x128xf32> to vector<1x8x8x128xbf16>
    %c0_54 = arith.constant 0 : index
    %c0_55 = arith.constant 0 : index
    %c0_56 = arith.constant 0 : index
    %c0_57 = arith.constant 0 : index
    %58 = vector.load %arg5[%c0_54, %c0_55, %c0_56, %c0_57] : memref<1x8x8x128xbf16, #tpu.memory_space<vmem>>, vector<1x8x8x128xbf16>
    tpu.vector_store %arg5[%c0_54, %c0_55, %c0_56, %c0_57], %57 {strides = array<i32>} : memref<1x8x8x128xbf16, #tpu.memory_space<vmem>>, vector<1x8x8x128xbf16>,
    %cst_58 = arith.constant dense<0.000000e+00> : vector<128xf32>
    %59 = vector.multi_reduction <add>, %55, %cst_58 [0] : vector<64x128xf32> to vector<128xf32>
    %60 = vector.shape_cast %59 : vector<128xf32> to vector<1x128xf32>
    %61 = arith.mulf %55, %55 : vector<64x128xf32>
    %cst_59 = arith.constant dense<0.000000e+00> : vector<128xf32>
    %62 = vector.multi_reduction <add>, %61, %cst_59 [0] : vector<64x128xf32> to vector<128xf32>
    %63 = vector.shape_cast %62 : vector<128xf32> to vector<1x128xf32>
    %64 = tpu.concatenate %60, %63 in 0 : vector<1x128xf32>, vector<1x128xf32> -> vector<2x128xf32>
    %65 = vector.shape_cast %64 : vector<2x128xf32> to vector<1x2x128xf32>
    %c0_60 = arith.constant 0 : index
    %c0_61 = arith.constant 0 : index
    %c0_62 = arith.constant 0 : index
    %66 = vector.load %arg6[%c0_60, %c0_61, %c0_62] : memref<1x2x128xf32, #tpu.memory_space<vmem>>, vector<1x2x128xf32>
    tpu.vector_store %arg6[%c0_60, %c0_61, %c0_62], %65 {strides = array<i32>} : memref<1x2x128xf32, #tpu.memory_space<vmem>>, vector<1x2x128xf32>,
    return
  }
  func.func @transform_0(%arg0: i32) -> (i32, i32, i32, i32) {
    %c0_i32 = arith.constant 0 : i32
    %c0_i32_0 = arith.constant 0 : i32
    %c0_i32_1 = arith.constant 0 : i32
    %c0_i32_2 = arith.constant 0 : i32
    return %arg0, %c0_i32, %c0_i32_0, %c0_i32_1 : i32, i32, i32, i32
  }
  func.func @transform_1(%arg0: i32) -> (i32, i32) {
    %c0_i32 = arith.constant 0 : i32
    %c0_i32_0 = arith.constant 0 : i32
    %c0_i32_1 = arith.constant 0 : i32
    return %c0_i32, %c0_i32_0 : i32, i32
  }
  func.func @transform_2(%arg0: i32) -> (i32, i32) {
    %c0_i32 = arith.constant 0 : i32
    %c0_i32_0 = arith.constant 0 : i32
    %c0_i32_1 = arith.constant 0 : i32
    return %c0_i32, %c0_i32_0 : i32, i32
  }
  func.func @transform_3(%arg0: i32) -> (i32, i32, i32) {
    %c0_i32 = arith.constant 0 : i32
    %c0_i32_0 = arith.constant 0 : i32
    %c0_i32_1 = arith.constant 0 : i32
    %c0_i32_2 = arith.constant 0 : i32
    return %c0_i32, %c0_i32_0, %c0_i32_1 : i32, i32, i32
  }
  func.func @transform_4(%arg0: i32) -> (i32, i32, i32, i32) {
    %c0_i32 = arith.constant 0 : i32
    %c0_i32_0 = arith.constant 0 : i32
    %c0_i32_1 = arith.constant 0 : i32
    %c0_i32_2 = arith.constant 0 : i32
    return %arg0, %c0_i32, %c0_i32_0, %c0_i32_1 : i32, i32, i32, i32
  }
  func.func @transform_5(%arg0: i32) -> (i32, i32, i32) {
    %c0_i32 = arith.constant 0 : i32
    %c0_i32_0 = arith.constant 0 : i32
    %c0_i32_1 = arith.constant 0 : i32
    return %arg0, %c0_i32, %c0_i32_0 : i32, i32, i32
  }
}

module attributes {stable_mosaic.version = 11 : i64} {
  func.func @_pw_conv_kernel(%arg0: i32, %arg1: memref<128x128xbf16, #tpu.memory_space<vmem>>, %arg2: memref<1x128xf32, #tpu.memory_space<vmem>>, %arg3: memref<1x128xf32, #tpu.memory_space<vmem>>, %arg4: memref<128x128xbf16, #tpu.memory_space<vmem>>, %arg5: memref<128x128xbf16, #tpu.memory_space<vmem>>, %arg6: memref<1x2x128xf32, #tpu.memory_space<vmem>>) attributes {dimension_semantics = [#tpu.dimension_semantics<parallel>], iteration_bounds = array<i64: 1>, scalar_prefetch = 0 : i64, scratch_operands = 0 : i64, tpu.core_type = #tpu.core_type<tc>, window_params = [{transform_indices = @transform_0, window_bounds = array<i64: 128, 128>}, {pipeline_mode = #tpu.pipeline_mode<synchronous>, transform_indices = @transform_1, window_bounds = array<i64: 1, 128>}, {pipeline_mode = #tpu.pipeline_mode<synchronous>, transform_indices = @transform_2, window_bounds = array<i64: 1, 128>}, {pipeline_mode = #tpu.pipeline_mode<synchronous>, transform_indices = @transform_3, window_bounds = array<i64: 128, 128>}, {transform_indices = @transform_4, window_bounds = array<i64: 128, 128>}, {transform_indices = @transform_5, window_bounds = array<i64: 1, 2, 128>}]} {
    %c0 = arith.constant 0 : index
    %c0_0 = arith.constant 0 : index
    %0 = vector.load %arg1[%c0, %c0_0] : memref<128x128xbf16, #tpu.memory_space<vmem>>, vector<128x128xbf16>
    %1 = arith.extf %0 : vector<128x128xbf16> to vector<128x128xf32>
    %c0_1 = arith.constant 0 : index
    %c0_2 = arith.constant 0 : index
    %2 = vector.load %arg2[%c0_1, %c0_2] : memref<1x128xf32, #tpu.memory_space<vmem>>, vector<1x128xf32>
    %3 = vector.broadcast %2 : vector<1x128xf32> to vector<128x128xf32>
    %4 = arith.mulf %1, %3 : vector<128x128xf32>
    %c0_3 = arith.constant 0 : index
    %c0_4 = arith.constant 0 : index
    %5 = vector.load %arg3[%c0_3, %c0_4] : memref<1x128xf32, #tpu.memory_space<vmem>>, vector<1x128xf32>
    %6 = vector.broadcast %5 : vector<1x128xf32> to vector<128x128xf32>
    %7 = arith.addf %4, %6 : vector<128x128xf32>
    %cst = arith.constant 0.000000e+00 : f32
    %8 = vector.broadcast %cst : f32 to vector<128x128xf32>
    %9 = arith.maximumf %7, %8 : vector<128x128xf32>
    %10 = arith.truncf %9 : vector<128x128xf32> to vector<128x128xbf16>
    %c0_5 = arith.constant 0 : index
    %c0_6 = arith.constant 0 : index
    %11 = vector.load %arg4[%c0_5, %c0_6] : memref<128x128xbf16, #tpu.memory_space<vmem>>, vector<128x128xbf16>
    %cst_7 = arith.constant dense<0.000000e+00> : vector<128x128xf32>
    %12 = tpu.matmul %10, %11, %cst_7 {dimension_numbers = #tpu.dot_dimension_numbers<[1], [0], [0], [1], [0, 0, 1, 1], [], []>} : vector<128x128xbf16>, vector<128x128xbf16>, vector<128x128xf32> -> vector<128x128xf32>
    %13 = arith.truncf %12 : vector<128x128xf32> to vector<128x128xbf16>
    %c0_8 = arith.constant 0 : index
    %c0_9 = arith.constant 0 : index
    %14 = vector.load %arg5[%c0_8, %c0_9] : memref<128x128xbf16, #tpu.memory_space<vmem>>, vector<128x128xbf16>
    tpu.vector_store %arg5[%c0_8, %c0_9], %13 {strides = array<i32>} : memref<128x128xbf16, #tpu.memory_space<vmem>>, vector<128x128xbf16>,
    %cst_10 = arith.constant dense<0.000000e+00> : vector<128xf32>
    %15 = vector.multi_reduction <add>, %12, %cst_10 [0] : vector<128x128xf32> to vector<128xf32>
    %16 = vector.shape_cast %15 : vector<128xf32> to vector<1x128xf32>
    %17 = arith.mulf %12, %12 : vector<128x128xf32>
    %cst_11 = arith.constant dense<0.000000e+00> : vector<128xf32>
    %18 = vector.multi_reduction <add>, %17, %cst_11 [0] : vector<128x128xf32> to vector<128xf32>
    %19 = vector.shape_cast %18 : vector<128xf32> to vector<1x128xf32>
    %20 = tpu.concatenate %16, %19 in 0 : vector<1x128xf32>, vector<1x128xf32> -> vector<2x128xf32>
    %21 = vector.shape_cast %20 : vector<2x128xf32> to vector<1x2x128xf32>
    %c0_12 = arith.constant 0 : index
    %c0_13 = arith.constant 0 : index
    %c0_14 = arith.constant 0 : index
    %22 = vector.load %arg6[%c0_12, %c0_13, %c0_14] : memref<1x2x128xf32, #tpu.memory_space<vmem>>, vector<1x2x128xf32>
    tpu.vector_store %arg6[%c0_12, %c0_13, %c0_14], %21 {strides = array<i32>} : memref<1x2x128xf32, #tpu.memory_space<vmem>>, vector<1x2x128xf32>,
    return
  }
  func.func @transform_0(%arg0: i32) -> (i32, i32) {
    %c0_i32 = arith.constant 0 : i32
    %c0_i32_0 = arith.constant 0 : i32
    return %arg0, %c0_i32 : i32, i32
  }
  func.func @transform_1(%arg0: i32) -> (i32, i32) {
    %c0_i32 = arith.constant 0 : i32
    %c0_i32_0 = arith.constant 0 : i32
    %c0_i32_1 = arith.constant 0 : i32
    return %c0_i32, %c0_i32_0 : i32, i32
  }
  func.func @transform_2(%arg0: i32) -> (i32, i32) {
    %c0_i32 = arith.constant 0 : i32
    %c0_i32_0 = arith.constant 0 : i32
    %c0_i32_1 = arith.constant 0 : i32
    return %c0_i32, %c0_i32_0 : i32, i32
  }
  func.func @transform_3(%arg0: i32) -> (i32, i32) {
    %c0_i32 = arith.constant 0 : i32
    %c0_i32_0 = arith.constant 0 : i32
    %c0_i32_1 = arith.constant 0 : i32
    return %c0_i32, %c0_i32_0 : i32, i32
  }
  func.func @transform_4(%arg0: i32) -> (i32, i32) {
    %c0_i32 = arith.constant 0 : i32
    %c0_i32_0 = arith.constant 0 : i32
    return %arg0, %c0_i32 : i32, i32
  }
  func.func @transform_5(%arg0: i32) -> (i32, i32, i32) {
    %c0_i32 = arith.constant 0 : i32
    %c0_i32_0 = arith.constant 0 : i32
    %c0_i32_1 = arith.constant 0 : i32
    return %arg0, %c0_i32, %c0_i32_0 : i32, i32, i32
  }
}

module attributes {stable_mosaic.version = 11 : i64} {
  func.func @_bn_add_relu_kernel(%arg0: i32, %arg1: memref<128x128xbf16, #tpu.memory_space<vmem>>, %arg2: memref<1x128xf32, #tpu.memory_space<vmem>>, %arg3: memref<1x128xf32, #tpu.memory_space<vmem>>, %arg4: memref<128x128xf32, #tpu.memory_space<vmem>>, %arg5: memref<128x128xf32, #tpu.memory_space<vmem>>) attributes {dimension_semantics = [#tpu.dimension_semantics<parallel>], iteration_bounds = array<i64: 1>, scalar_prefetch = 0 : i64, scratch_operands = 0 : i64, tpu.core_type = #tpu.core_type<tc>, window_params = [{transform_indices = @transform_0, window_bounds = array<i64: 128, 128>}, {pipeline_mode = #tpu.pipeline_mode<synchronous>, transform_indices = @transform_1, window_bounds = array<i64: 1, 128>}, {pipeline_mode = #tpu.pipeline_mode<synchronous>, transform_indices = @transform_2, window_bounds = array<i64: 1, 128>}, {transform_indices = @transform_3, window_bounds = array<i64: 128, 128>}, {transform_indices = @transform_4, window_bounds = array<i64: 128, 128>}]} {
    %c0 = arith.constant 0 : index
    %c0_0 = arith.constant 0 : index
    %0 = vector.load %arg1[%c0, %c0_0] : memref<128x128xbf16, #tpu.memory_space<vmem>>, vector<128x128xbf16>
    %1 = arith.extf %0 : vector<128x128xbf16> to vector<128x128xf32>
    %c0_1 = arith.constant 0 : index
    %c0_2 = arith.constant 0 : index
    %2 = vector.load %arg2[%c0_1, %c0_2] : memref<1x128xf32, #tpu.memory_space<vmem>>, vector<1x128xf32>
    %3 = vector.broadcast %2 : vector<1x128xf32> to vector<128x128xf32>
    %4 = arith.mulf %1, %3 : vector<128x128xf32>
    %c0_3 = arith.constant 0 : index
    %c0_4 = arith.constant 0 : index
    %5 = vector.load %arg3[%c0_3, %c0_4] : memref<1x128xf32, #tpu.memory_space<vmem>>, vector<1x128xf32>
    %6 = vector.broadcast %5 : vector<1x128xf32> to vector<128x128xf32>
    %7 = arith.addf %4, %6 : vector<128x128xf32>
    %c0_5 = arith.constant 0 : index
    %c0_6 = arith.constant 0 : index
    %8 = vector.load %arg4[%c0_5, %c0_6] : memref<128x128xf32, #tpu.memory_space<vmem>>, vector<128x128xf32>
    %9 = arith.addf %7, %8 : vector<128x128xf32>
    %cst = arith.constant 0.000000e+00 : f32
    %10 = vector.broadcast %cst : f32 to vector<128x128xf32>
    %11 = arith.maximumf %9, %10 : vector<128x128xf32>
    %c0_7 = arith.constant 0 : index
    %c0_8 = arith.constant 0 : index
    %12 = vector.load %arg5[%c0_7, %c0_8] : memref<128x128xf32, #tpu.memory_space<vmem>>, vector<128x128xf32>
    tpu.vector_store %arg5[%c0_7, %c0_8], %11 {strides = array<i32>} : memref<128x128xf32, #tpu.memory_space<vmem>>, vector<128x128xf32>,
    return
  }
  func.func @transform_0(%arg0: i32) -> (i32, i32) {
    %c0_i32 = arith.constant 0 : i32
    %c0_i32_0 = arith.constant 0 : i32
    return %arg0, %c0_i32 : i32, i32
  }
  func.func @transform_1(%arg0: i32) -> (i32, i32) {
    %c0_i32 = arith.constant 0 : i32
    %c0_i32_0 = arith.constant 0 : i32
    %c0_i32_1 = arith.constant 0 : i32
    return %c0_i32, %c0_i32_0 : i32, i32
  }
  func.func @transform_2(%arg0: i32) -> (i32, i32) {
    %c0_i32 = arith.constant 0 : i32
    %c0_i32_0 = arith.constant 0 : i32
    %c0_i32_1 = arith.constant 0 : i32
    return %c0_i32, %c0_i32_0 : i32, i32
  }
  func.func @transform_3(%arg0: i32) -> (i32, i32) {
    %c0_i32 = arith.constant 0 : i32
    %c0_i32_0 = arith.constant 0 : i32
    return %arg0, %c0_i32 : i32, i32
  }
  func.func @transform_4(%arg0: i32) -> (i32, i32) {
    %c0_i32 = arith.constant 0 : i32
    %c0_i32_0 = arith.constant 0 : i32
    return %arg0, %c0_i32 : i32, i32
  }
}

</mosaic_0001>

<bundles_post_ra>
// kernel: bottleneck_forward.6
= control target key start
LH: loop header
LB: loop body
LE: loop exit
PB: predicated region body
PF: predicated region fallthrough
CT: control target
= control target key end

     0   :  { %vm318_vm0 = vcmask 1040384   ;;  %s634_s3 = inlined_call_operand.vmem [shape: bf16[128,128], index: 3, kind: input, shape index: {}]   ;;  %s635_s1 = inlined_call_operand.vmem [shape: f32[1,128], index: 1, kind: input, shape index: {}]   ;;  %s636_s2 = inlined_call_operand.vmem [shape: f32[1,128], index: 2, kind: input, shape index: {}]   ;;  %s637_s0 = inlined_call_operand.vmem [shape: bf16[128,128], index: 0, kind: input, shape index: {}]   ;;  %s638_s4 = inlined_call_operand.vmem [shape: bf16[128,128], index: 4, kind: output, shape index: {0}]   ;;  %s639_s5 = inlined_call_operand.vmem [shape: f32[1,2,128], index: 5, kind: output, shape index: {1}]  }
   0x1   :  { %v368_v0 = vld [vmem:[%s634_s3 + $0x38] sm:$0xff]  ;;  %v367_v1 = vld [vmem:[%s634_s3 + $0x30] sm:$0xff]  ;;  %v366_v2 = vld [vmem:[%s634_s3 + $0x28] sm:$0xff] }
   0x2   :  { %179 = vmatpush.bf16.msra.mxu0 %v368_v0  ;;  %455 = vmatpush.bf16.msra.mxu1 %v368_v0  ;;  %v370_v3 = vld [vmem:[%s637_s0] sm:$0xff]   ;;  %v442_v5 = vld [vmem:[%s637_s0 + $0x10] sm:$0xff]   ;;  %v364_v15 = vld [vmem:[%s634_s3 + $0x18] sm:$0xff] }
   0x3   :  { %456 = vmatpush.bf16.msra.mxu2 %v368_v0  ;;  %457 = vmatpush.bf16.msra.mxu3 %v368_v0  ;;  %v365_v4 = vld [vmem:[%s634_s3 + $0x20] sm:$0xff]  ;;  %v446_v7 = vld [vmem:[%s637_s0 + $0x30] sm:$0xff]   ;;  %v371_v8 = vunpack.c.l.bf16 %v370_v3  ;;  %v372_v9 = vunpack.c.h.bf16 %v370_v3  ;;  %v379_v11 = vunpack.c.l.bf16 %v442_v5  ;;  %v380_v12 = vunpack.c.h.bf16 %v442_v5  ;;  %v362_v34 = vld [vmem:[%s634_s3 + $0x8] sm:$0xff] }
   0x4   :  { %v444_v6 = vld [vmem:[%s637_s0 + $0x20] sm:$0xff]   ;;  %v395_v16 = vunpack.c.l.bf16 %v446_v7  ;;  %v396_v17 = vunpack.c.h.bf16 %v446_v7  ;;  %v363_v25 = vld [vmem:[%s634_s3 + $0x10] sm:$0xff]  ;;  %v441_v43 = vld [vmem:[%s637_s0 + $0x8] sm:$0xff]  }
   0x5   :  { %v538_v10 = vld [vmem:[%s635_s1] ss:$0 sm:$0xff]  ;;  %v387_v13 = vunpack.c.l.bf16 %v444_v6  ;;  %v388_v14 = vunpack.c.h.bf16 %v444_v6  ;;  %v443_v44 = vld [vmem:[%s637_s0 + $0x18] sm:$0xff]   ;;  %v445_v48 = vld [vmem:[%s637_s0 + $0x28] sm:$0xff]   ;;  %v375_v51 = vunpack.c.l.bf16 %v441_v43  ;;  %v376_v52 = vunpack.c.h.bf16 %v441_v43 }
   0x6   :  { %180 = vmatpush.bf16.msra.mxu0 %v367_v1  ;;  %458 = vmatpush.bf16.msra.mxu1 %v367_v1  ;;  %v55_v18 = vmul.f32 %v538_v10, %v371_v8  ;;  %v56_v19 = vmul.f32 %v538_v10, %v372_v9  ;;  %v548_v20 = vld [vmem:[%s636_s2] ss:$0 sm:$0xff]  ;;  %v59_v21 = vmul.f32 %v538_v10, %v379_v11  ;;  %v447_v49 = vld [vmem:[%s637_s0 + $0x38] sm:$0xff]   ;;  %v383_v53 = vunpack.c.l.bf16 %v443_v44 }
   0x7   :  { %459 = vmatpush.bf16.msra.mxu2 %v367_v1  ;;  %460 = vmatpush.bf16.msra.mxu3 %v367_v1  ;;  %v60_v22 = vmul.f32 %v538_v10, %v380_v12  ;;  %v63_v23 = vmul.f32 %v538_v10, %v387_v13  ;;  %v64_v24 = vmul.f32 %v538_v10, %v388_v14  ;;  %v361_v45 = vld [vmem:[%s634_s3] sm:$0xff]  ;;  %v384_v56 = vunpack.c.h.bf16 %v443_v44 }
   0x8   :  { %v67_v26 = vmul.f32 %v538_v10, %v395_v16  ;;  %v68_v27 = vmul.f32 %v538_v10, %v396_v17  ;;  %v75_v28 = vadd.f32 %v548_v20, %v55_v18  ;;  %v76_v29 = vadd.f32 %v548_v20, %v56_v19 }
   0x9   :  { %v79_v30 = vadd.f32 %v548_v20, %v59_v21  ;;  %v80_v31 = vadd.f32 %v548_v20, %v60_v22  ;;  %v83_v32 = vadd.f32 %v548_v20, %v63_v23  ;;  %v84_v33 = vadd.f32 %v548_v20, %v64_v24 }
   0xa   :  { %181 = vmatpush.bf16.msra.mxu0 %v366_v2  ;;  %461 = vmatpush.bf16.msra.mxu1 %v366_v2  ;;  %v87_v35 = vadd.f32 %v548_v20, %v67_v26  ;;  %v88_v36 = vadd.f32 %v548_v20, %v68_v27  ;;  %v91_v37 = vmax.f32 %v75_v28, 0.0  ;;  %v92_v38 = vmax.f32 %v76_v29, 0.0 }
   0xb   :  { %462 = vmatpush.bf16.msra.mxu2 %v366_v2  ;;  %463 = vmatpush.bf16.msra.mxu3 %v366_v2  ;;  %v95_v39 = vmax.f32 %v79_v30, 0.0  ;;  %v96_v40 = vmax.f32 %v80_v31, 0.0  ;;  %v99_v41 = vmax.f32 %v83_v32, 0.0  ;;  %v100_v42 = vmax.f32 %v84_v33, 0.0 }
   0xc   :  { %v103_v46 = vmax.f32 %v87_v35, 0.0  ;;  %v104_v47 = vmax.f32 %v88_v36, 0.0  ;;  %v107_v50 = vpack.c.bf16 %v92_v38, %v91_v37  ;;  %v391_v57 = vunpack.c.l.bf16 %v445_v48 }
   0xd   :  { %v109_v54 = vpack.c.bf16 %v96_v40, %v95_v39  ;;  %v111_v55 = vpack.c.bf16 %v100_v42, %v99_v41  ;;  %v392_v59 = vunpack.c.h.bf16 %v445_v48  ;;  %v399_v60 = vunpack.c.l.bf16 %v447_v49 }
   0xe   :  { %182 = vmatpush.bf16.msra.mxu0 %v365_v4  ;;  %464 = vmatpush.bf16.msra.mxu1 %v365_v4  ;;  %v113_v58 = vpack.c.bf16 %v104_v47, %v103_v46  ;;  %v400_v61 = vunpack.c.h.bf16 %v447_v49  ;;  %v57_v62 = vmul.f32 %v538_v10, %v375_v51  ;;  %v58_v63 = vmul.f32 %v538_v10, %v376_v52 }
   0xf   :  { %465 = vmatpush.bf16.msra.mxu2 %v365_v4  ;;  %466 = vmatpush.bf16.msra.mxu3 %v365_v4  ;;  %v61_v0 = vmul.f32 %v538_v10, %v383_v53  ;;  %v62_v1 = vmul.f32 %v538_v10, %v384_v56  ;;  %v65_v2 = vmul.f32 %v538_v10, %v391_v57 }
  0x10   :  { %v66_v3 = vmul.f32 %v538_v10, %v392_v59  ;;  %v69_v4 = vmul.f32 %v538_v10, %v399_v60  ;;  %v70_v5 = vmul.f32 %v538_v10, %v400_v61  ;;  %v77_v6 = vadd.f32 %v548_v20, %v57_v62 }
  0x11   :  { %v78_v7 = vadd.f32 %v548_v20, %v58_v63  ;;  %v81_v8 = vadd.f32 %v548_v20, %v61_v0  ;;  %v82_v9 = vadd.f32 %v548_v20, %v62_v1  ;;  %v85_v11 = vadd.f32 %v548_v20, %v65_v2 }
  0x12   :  { %183 = vmatpush.bf16.msra.mxu0 %v364_v15  ;;  %467 = vmatpush.bf16.msra.mxu1 %v364_v15  ;;  %v86_v12 = vadd.f32 %v548_v20, %v66_v3  ;;  %v89_v13 = vadd.f32 %v548_v20, %v69_v4  ;;  %v90_v14 = vadd.f32 %v548_v20, %v70_v5 }
  0x13   :  { %468 = vmatpush.bf16.msra.mxu2 %v364_v15  ;;  %469 = vmatpush.bf16.msra.mxu3 %v364_v15  ;;  %v93_v15 = vmax.f32 %v77_v6, 0.0  ;;  %v94_v16 = vmax.f32 %v78_v7, 0.0  ;;  %v97_v17 = vmax.f32 %v81_v8, 0.0  ;;  %v98_v10 = vmax.f32 %v82_v9, 0.0 }
  0x14   :  { %v101_v18 = vmax.f32 %v85_v11, 0.0  ;;  %v102_v19 = vmax.f32 %v86_v12, 0.0  ;;  %v105_v21 = vmax.f32 %v89_v13, 0.0  ;;  %v106_v22 = vmax.f32 %v90_v14, 0.0 }
  0x15   :  { %v108_v23 = vpack.c.bf16 %v94_v16, %v93_v15  ;;  %v110_v24 = vpack.c.bf16 %v98_v10, %v97_v17 }
  0x16   :  { %184 = vmatpush.bf16.msra.mxu0 %v363_v25  ;;  %470 = vmatpush.bf16.msra.mxu1 %v363_v25  ;;  %v114_v26 = vpack.c.bf16 %v106_v22, %v105_v21 }
  0x17   :  { %471 = vmatpush.bf16.msra.mxu2 %v363_v25  ;;  %472 = vmatpush.bf16.msra.mxu3 %v363_v25  ;;  %v112_v25 = vpack.c.bf16 %v102_v19, %v101_v18 }
  0x1a   :  { %185 = vmatpush.bf16.msra.mxu0 %v362_v34  ;;  %473 = vmatpush.bf16.msra.mxu1 %v362_v34 }
  0x1b   :  { %474 = vmatpush.bf16.msra.mxu2 %v362_v34  ;;  %475 = vmatpush.bf16.msra.mxu3 %v362_v34 }
  0x1e   :  { %186 = vmatpush.bf16.msra.mxu0 %v361_v45  ;;  %476 = vmatpush.bf16.msra.mxu1 %v361_v45 }
  0x1f   :  { %477 = vmatpush.bf16.msra.mxu2 %v361_v45  ;;  %478 = vmatpush.bf16.msra.mxu3 %v361_v45 }
  0x21   :  { %187 = vmatmul.bf16.vlgmr.msra.gmra.mxu0 %v107_v50  ;;  %197 = vmatmul.bf16.vlgmr.msra.gmra.mxu1 %v109_v54 }
  0x22   :  { %207 = vmatmul.bf16.vlgmr.msra.gmra.mxu2 %v111_v55  ;;  %217 = vmatmul.bf16.vlgmr.msra.gmra.mxu3 %v113_v58 }
  0x31   :  { %192 = vmatmul.bf16.gmra.mxu0 %v108_v23  ;;  %202 = vmatmul.bf16.gmra.mxu1 %v110_v24 }
  0x32   :  { %212 = vmatmul.bf16.gmra.mxu2 %v112_v25  ;;  %222 = vmatmul.bf16.gmra.mxu3 %v114_v26 }
  0x9e   :  { %v188_v27 = vpop.f32.mrf.mxu0  ;;  %v198_v28 = vpop.f32.mrf.mxu1 }
  0x9f   :  { %v281_v41 = vmul.f32 %v188_v27, %v188_v27  ;;  %v285_v55 = vmul.f32 %v198_v28, %v198_v28 }
  0xa5   :  { %v208_v29 = vpop.f32.mrf.mxu2  ;;  %v601_v20 = vpop.f32.mrf.mxu3 }
  0xa6   :  { %v190_v30 = vpop.f32.mrf.mxu0  ;;  %v200_v31 = vpop.f32.mrf.mxu1  ;;  %v289_v7 = vmul.f32 %v208_v29, %v208_v29  ;;  %v293_v19 = vmul.f32 %v601_v20, %v601_v20 }
  0xa7   :  { %v404_v32 = vpack.c.bf16 %v190_v30, %v188_v27  ;;  %v414_v33 = vpack.c.bf16 %v200_v31, %v198_v28  ;;  %v282_v40 = vmul.f32 %v190_v30, %v190_v30  ;;  %v260_v43 = vadd.f32 %v190_v30, %v188_v27 }
  0xa8   :  { %v286_v58 = vmul.f32 %v200_v31, %v200_v31 }
  0xa9   :  { %405 = vst [vmem:[%s638_s4] sm:$0xff] %v404_v32   ;;  %v297_v44 = vadd.f32 %v282_v40, %v281_v41 }
  0xaa   :  { %449 = vst [vmem:[%s638_s4 + $0x10] sm:$0xff] %v414_v33  }
  0xad   :  { %v210_v34 = vpop.f32.mrf.mxu2  ;;  %v220_v35 = vpop.f32.mrf.mxu3 }
  0xae   :  { %v193_v36 = vpop.f32.mrf.mxu0  ;;  %v203_v37 = vpop.f32.mrf.mxu1  ;;  %v424_v38 = vpack.c.bf16 %v210_v34, %v208_v29  ;;  %v434_v39 = vpack.c.bf16 %v220_v35, %v601_v20  ;;  %v290_v11 = vmul.f32 %v210_v34, %v210_v34  ;;  %v294_v23 = vmul.f32 %v220_v35, %v220_v35 }
  0xaf   :  { %v283_v42 = vmul.f32 %v193_v36, %v193_v36  ;;  %v261_v45 = vadd.f32 %v260_v43, %v193_v36  ;;  %v287_v61 = vmul.f32 %v203_v37, %v203_v37 }
  0xb0   :  { %451 = vst [vmem:[%s638_s4 + $0x20] sm:$0xff] %v424_v38  }
  0xb1   :  { %453 = vst [vmem:[%s638_s4 + $0x30] sm:$0xff] %v434_v39   ;;  %v298_v48 = vadd.f32 %v297_v44, %v283_v42 }
  0xb5   :  { %v213_v46 = vpop.f32.mrf.mxu2  ;;  %v223_v47 = vpop.f32.mrf.mxu3 }
  0xb6   :  { %v195_v49 = vpop.f32.mrf.mxu0  ;;  %v205_v50 = vpop.f32.mrf.mxu1  ;;  %v291_v15 = vmul.f32 %v213_v46, %v213_v46  ;;  %v295_v27 = vmul.f32 %v223_v47, %v223_v47 }
  0xb7   :  { %v409_v51 = vpack.c.bf16 %v195_v49, %v193_v36  ;;  %v262_v52 = vadd.f32 %v261_v45, %v195_v49  ;;  %v284_v53 = vmul.f32 %v195_v49, %v195_v49  ;;  %v419_v54 = vpack.c.bf16 %v205_v50, %v203_v37 }
  0xb8   :  { %v288_v5 = vmul.f32 %v205_v50, %v205_v50 }
  0xb9   :  { %448 = vst [vmem:[%s638_s4 + $0x8] sm:$0xff] %v409_v51   ;;  %v263_v56 = vadd.f32 %v262_v52, %v198_v28  ;;  %v299_v57 = vadd.f32 %v298_v48, %v284_v53 }
  0xba   :  { %450 = vst [vmem:[%s638_s4 + $0x18] sm:$0xff] %v419_v54  }
  0xbb   :  { %v300_v59 = vadd.f32 %v299_v57, %v285_v55  ;;  %v264_v60 = vadd.f32 %v263_v56, %v200_v31 }
  0xbd   :  { %v265_v62 = vadd.f32 %v264_v60, %v203_v37  ;;  %v301_v63 = vadd.f32 %v300_v59, %v286_v58  ;;  %v215_v0 = vpop.f32.mrf.mxu2  ;;  %v225_v1 = vpop.f32.mrf.mxu3 }
  0xbe   :  { %v429_v2 = vpack.c.bf16 %v215_v0, %v213_v46  ;;  %v439_v3 = vpack.c.bf16 %v225_v1, %v223_v47  ;;  %v292_v18 = vmul.f32 %v215_v0, %v215_v0  ;;  %v296_v31 = vmul.f32 %v225_v1, %v225_v1 }
  0xbf   :  { %v266_v4 = vadd.f32 %v265_v62, %v205_v50  ;;  %v302_v6 = vadd.f32 %v301_v63, %v287_v61 }
  0xc0   :  { %452 = vst [vmem:[%s638_s4 + $0x28] sm:$0xff] %v429_v2  }
  0xc1   :  { %v267_v8 = vadd.f32 %v266_v4, %v208_v29  ;;  %v303_v9 = vadd.f32 %v302_v6, %v288_v5  ;;  %454 = vst [vmem:[%s638_s4 + $0x38] sm:$0xff] %v439_v3  }
  0xc3   :  { %v304_v12 = vadd.f32 %v303_v9, %v289_v7  ;;  %v268_v13 = vadd.f32 %v267_v8, %v210_v34 }
  0xc5   :  { %v269_v14 = vadd.f32 %v268_v13, %v213_v46  ;;  %v305_v16 = vadd.f32 %v304_v12, %v290_v11 }
  0xc7   :  { %v306_v17 = vadd.f32 %v305_v16, %v291_v15  ;;  %v270_v10 = vadd.f32 %v269_v14, %v215_v0 }
  0xc9   :  { %v271_v21 = vadd.f32 %v270_v10, %v601_v20  ;;  %v307_v22 = vadd.f32 %v306_v17, %v292_v18 }
  0xcb   :  { %v308_v24 = vadd.f32 %v307_v22, %v293_v19  ;;  %v272_v25 = vadd.f32 %v271_v21, %v220_v35 }
  0xcd   :  { %v273_v26 = vadd.f32 %v272_v25, %v223_v47  ;;  %v309_v28 = vadd.f32 %v308_v24, %v294_v23 }
  0xcf   :  { %v310_v29 = vadd.f32 %v309_v28, %v295_v27  ;;  %v274_v30 = vadd.f32 %v273_v26, %v225_v1 }
  0xd1   :  { %v275_v32 = vrot.slane %v274_v30, 4  ;;  %v311_v33 = vadd.f32 %v310_v29, %v296_v31 }
  0xd3   :  { %v276_v34 = vadd.f32 %v275_v32, %v274_v30  ;;  %v312_v36 = vrot.slane %v311_v33, 4 }
  0xd5   :  { %v277_v37 = vrot.slane %v276_v34, 2  ;;  %v313_v38 = vadd.f32 %v312_v36, %v311_v33 }
  0xd7   :  { %v278_v39 = vadd.f32 %v277_v37, %v276_v34  ;;  %v314_v40 = vrot.slane %v313_v38, 2 }
  0xd9   :  { %v279_v41 = vrot.slane %v278_v39, 1  ;;  %v315_v20 = vadd.f32 %v314_v40, %v313_v38 }
  0xdb   :  { %v316_v42 = vrot.slane %v315_v20, 1  ;;  %v280_v43 = vadd.f32 %v279_v41, %v278_v39 }
  0xdd   :  { %v317_v35 = vadd.f32 %v316_v42, %v315_v20 }
  0xdf   :  { %v319_v44 = vsel %vm318_vm0, %v280_v43, %v317_v35 }
  0xe0   :  { %320 = vst [vmem:[%s639_s5] sm:$0x3] %v319_v44 }

// kernel: bottleneck_forward.7
= control target key start
LH: loop header
LB: loop body
LE: loop exit
PB: predicated region body
PF: predicated region fallthrough
CT: control target
= control target key end

     0   :  { %s385_s0 = inlined_call_operand.vmem [shape: bf16[128,128], index: 0, kind: input, shape index: {}]   ;;  %s386_s1 = inlined_call_operand.vmem [shape: f32[1,128], index: 1, kind: input, shape index: {}]   ;;  %s387_s2 = inlined_call_operand.vmem [shape: f32[1,128], index: 2, kind: input, shape index: {}]   ;;  %s388_s3 = inlined_call_operand.vmem [shape: f32[128,128], index: 3, kind: input, shape index: {}]   ;;  %s389_s4 = inlined_call_operand.vmem [shape: f32[128,128], index: 4, kind: output, shape index: {}]  }
   0x1   :  { %v158_v0 = vld [vmem:[%s385_s0] sm:$0xff]   ;;  %v189_v5 = vld [vmem:[%s385_s0 + $0x8] sm:$0xff]   ;;  %v190_v10 = vld [vmem:[%s385_s0 + $0x10] sm:$0xff]  }
   0x2   :  { %v229_v1 = vld [vmem:[%s386_s1] ss:$0 sm:$0xff]  ;;  %v159_v2 = vunpack.c.l.bf16 %v158_v0  ;;  %v160_v4 = vunpack.c.h.bf16 %v158_v0  ;;  %v163_v8 = vunpack.c.l.bf16 %v189_v5  ;;  %v164_v9 = vunpack.c.h.bf16 %v189_v5  ;;  %v90_v12 = vld [vmem:[%s388_s3 + $0x8] sm:$0xff]  ;;  %v191_v15 = vld [vmem:[%s385_s0 + $0x18] sm:$0xff]  }
   0x3   :  { %v234_v3 = vld [vmem:[%s387_s2] ss:$0 sm:$0xff]  ;;  %v167_v13 = vunpack.c.l.bf16 %v190_v10  ;;  %v168_v14 = vunpack.c.h.bf16 %v190_v10  ;;  %v91_v20 = vld [vmem:[%s388_s3 + $0x10] sm:$0xff]  ;;  %v92_v21 = vld [vmem:[%s388_s3 + $0x18] sm:$0xff]  ;;  %v171_v24 = vunpack.c.l.bf16 %v191_v15  ;;  %v172_v25 = vunpack.c.h.bf16 %v191_v15 }
   0x4   :  { %v53_v6 = vmul.f32 %v229_v1, %v159_v2  ;;  %v54_v7 = vmul.f32 %v229_v1, %v160_v4  ;;  %v89_v11 = vld [vmem:[%s388_s3] sm:$0xff]  ;;  %v55_v18 = vmul.f32 %v229_v1, %v163_v8  ;;  %v56_v19 = vmul.f32 %v229_v1, %v164_v9  ;;  %v94_v31 = vld [vmem:[%s388_s3 + $0x28] sm:$0xff]  ;;  %v95_v41 = vld [vmem:[%s388_s3 + $0x30] sm:$0xff] }
   0x5   :  { %v57_v22 = vmul.f32 %v229_v1, %v167_v13  ;;  %v58_v23 = vmul.f32 %v229_v1, %v168_v14  ;;  %v93_v30 = vld [vmem:[%s388_s3 + $0x20] sm:$0xff]  ;;  %v59_v34 = vmul.f32 %v229_v1, %v171_v24  ;;  %v60_v35 = vmul.f32 %v229_v1, %v172_v25  ;;  %v96_v42 = vld [vmem:[%s388_s3 + $0x38] sm:$0xff]  ;;  %v193_v47 = vld [vmem:[%s385_s0 + $0x28] sm:$0xff]  }
   0x6   :  { %v73_v16 = vadd.f32 %v234_v3, %v53_v6  ;;  %v74_v17 = vadd.f32 %v234_v3, %v54_v7  ;;  %v75_v28 = vadd.f32 %v234_v3, %v55_v18  ;;  %v76_v29 = vadd.f32 %v234_v3, %v56_v19  ;;  %v192_v36 = vld [vmem:[%s385_s0 + $0x20] sm:$0xff]   ;;  %v194_v52 = vld [vmem:[%s385_s0 + $0x30] sm:$0xff]   ;;  %v195_v61 = vld [vmem:[%s385_s0 + $0x38] sm:$0xff]  }
   0x7   :  { %v77_v32 = vadd.f32 %v234_v3, %v57_v22  ;;  %v78_v33 = vadd.f32 %v234_v3, %v58_v23  ;;  %v79_v45 = vadd.f32 %v234_v3, %v59_v34  ;;  %v80_v46 = vadd.f32 %v234_v3, %v60_v35  ;;  %v97_v0 = vld [vmem:[%s388_s3 + $0x40] sm:$0xff]  ;;  %v98_v2 = vld [vmem:[%s388_s3 + $0x48] sm:$0xff]  ;;  %v99_v10 = vld [vmem:[%s388_s3 + $0x50] sm:$0xff] }
   0x8   :  { %v105_v26 = vadd.f32 %v89_v11, %v73_v16  ;;  %v106_v27 = vadd.f32 %v90_v12, %v74_v17  ;;  %v107_v39 = vadd.f32 %v91_v20, %v75_v28  ;;  %v108_v40 = vadd.f32 %v92_v21, %v76_v29  ;;  %v100_v11 = vld [vmem:[%s388_s3 + $0x58] sm:$0xff]  ;;  %v101_v20 = vld [vmem:[%s388_s3 + $0x60] sm:$0xff]  ;;  %v102_v21 = vld [vmem:[%s388_s3 + $0x68] sm:$0xff] }
   0x9   :  { %v109_v43 = vadd.f32 %v93_v30, %v77_v32  ;;  %v110_v44 = vadd.f32 %v94_v31, %v78_v33  ;;  %v175_v50 = vunpack.c.l.bf16 %v192_v36  ;;  %v176_v51 = vunpack.c.h.bf16 %v192_v36  ;;  %v103_v30 = vld [vmem:[%s388_s3 + $0x70] sm:$0xff]  ;;  %v104_v31 = vld [vmem:[%s388_s3 + $0x78] sm:$0xff] }
   0xa   :  { %v121_v37 = vmax.f32 %v105_v26, 0.0  ;;  %v122_v38 = vmax.f32 %v106_v27, 0.0  ;;  %v123_v48 = vmax.f32 %v107_v39, 0.0  ;;  %v124_v49 = vmax.f32 %v108_v40, 0.0 }
   0xb   :  { %v125_v53 = vmax.f32 %v109_v43, 0.0  ;;  %v126_v54 = vmax.f32 %v110_v44, 0.0  ;;  %v111_v55 = vadd.f32 %v95_v41, %v79_v45  ;;  %v112_v56 = vadd.f32 %v96_v42, %v80_v46 }
   0xc   :  { %137 = vst [vmem:[%s389_s4] sm:$0xff] %v121_v37  ;;  %v61_v57 = vmul.f32 %v229_v1, %v175_v50  ;;  %v62_v58 = vmul.f32 %v229_v1, %v176_v51  ;;  %v179_v59 = vunpack.c.l.bf16 %v193_v47  ;;  %v180_v60 = vunpack.c.h.bf16 %v193_v47 }
   0xd   :  { %138 = vst [vmem:[%s389_s4 + $0x8] sm:$0xff] %v122_v38  ;;  %v127_v62 = vmax.f32 %v111_v55, 0.0  ;;  %v128_v63 = vmax.f32 %v112_v56, 0.0  ;;  %v183_v4 = vunpack.c.l.bf16 %v194_v52  ;;  %v184_v5 = vunpack.c.h.bf16 %v194_v52 }
   0xe   :  { %139 = vst [vmem:[%s389_s4 + $0x10] sm:$0xff] %v123_v48  ;;  %v81_v6 = vadd.f32 %v234_v3, %v61_v57  ;;  %v82_v7 = vadd.f32 %v234_v3, %v62_v58  ;;  %v63_v8 = vmul.f32 %v229_v1, %v179_v59  ;;  %v64_v9 = vmul.f32 %v229_v1, %v180_v60 }
   0xf   :  { %140 = vst [vmem:[%s389_s4 + $0x18] sm:$0xff] %v124_v49  ;;  %v65_v12 = vmul.f32 %v229_v1, %v183_v4  ;;  %v66_v13 = vmul.f32 %v229_v1, %v184_v5  ;;  %v187_v14 = vunpack.c.l.bf16 %v195_v61  ;;  %v188_v15 = vunpack.c.h.bf16 %v195_v61 }
  0x10   :  { %141 = vst [vmem:[%s389_s4 + $0x20] sm:$0xff] %v125_v53  ;;  %v113_v16 = vadd.f32 %v97_v0, %v81_v6  ;;  %v114_v17 = vadd.f32 %v98_v2, %v82_v7  ;;  %v83_v18 = vadd.f32 %v234_v3, %v63_v8  ;;  %v84_v19 = vadd.f32 %v234_v3, %v64_v9 }
  0x11   :  { %142 = vst [vmem:[%s389_s4 + $0x28] sm:$0xff] %v126_v54  ;;  %v85_v22 = vadd.f32 %v234_v3, %v65_v12  ;;  %v86_v23 = vadd.f32 %v234_v3, %v66_v13  ;;  %v67_v24 = vmul.f32 %v229_v1, %v187_v14  ;;  %v68_v25 = vmul.f32 %v229_v1, %v188_v15 }
  0x12   :  { %143 = vst [vmem:[%s389_s4 + $0x30] sm:$0xff] %v127_v62  ;;  %v129_v26 = vmax.f32 %v113_v16, 0.0  ;;  %v130_v27 = vmax.f32 %v114_v17, 0.0  ;;  %v115_v28 = vadd.f32 %v99_v10, %v83_v18  ;;  %v116_v29 = vadd.f32 %v100_v11, %v84_v19 }
  0x13   :  { %144 = vst [vmem:[%s389_s4 + $0x38] sm:$0xff] %v128_v63  ;;  %v117_v32 = vadd.f32 %v101_v20, %v85_v22  ;;  %v118_v33 = vadd.f32 %v102_v21, %v86_v23  ;;  %v87_v34 = vadd.f32 %v234_v3, %v67_v24  ;;  %v88_v35 = vadd.f32 %v234_v3, %v68_v25 }
  0x14   :  { %145 = vst [vmem:[%s389_s4 + $0x40] sm:$0xff] %v129_v26  ;;  %v131_v1 = vmax.f32 %v115_v28, 0.0  ;;  %v132_v36 = vmax.f32 %v116_v29, 0.0 }
  0x15   :  { %146 = vst [vmem:[%s389_s4 + $0x48] sm:$0xff] %v130_v27  ;;  %v133_v37 = vmax.f32 %v117_v32, 0.0  ;;  %v134_v38 = vmax.f32 %v118_v33, 0.0  ;;  %v119_v39 = vadd.f32 %v103_v30, %v87_v34  ;;  %v120_v40 = vadd.f32 %v104_v31, %v88_v35 }
  0x16   :  { %147 = vst [vmem:[%s389_s4 + $0x50] sm:$0xff] %v131_v1 }
  0x17   :  { %148 = vst [vmem:[%s389_s4 + $0x58] sm:$0xff] %v132_v36  ;;  %v135_v3 = vmax.f32 %v119_v39, 0.0  ;;  %v136_v41 = vmax.f32 %v120_v40, 0.0 }
  0x18   :  { %149 = vst [vmem:[%s389_s4 + $0x60] sm:$0xff] %v133_v37 }
  0x19   :  { %150 = vst [vmem:[%s389_s4 + $0x68] sm:$0xff] %v134_v38 }
  0x1a   :  { %151 = vst [vmem:[%s389_s4 + $0x70] sm:$0xff] %v135_v3 }
  0x1b   :  { %152 = vst [vmem:[%s389_s4 + $0x78] sm:$0xff] %v136_v41 }

// kernel: bottleneck_forward.4
= control target key start
LH: loop header
LB: loop body
LE: loop exit
PB: predicated region body
PF: predicated region fallthrough
CT: control target
= control target key end

     0   :  { %vm246_vm0 = vcmask 1040384   ;;  %s503_s1 = inlined_call_operand.vmem [shape: f32[1,128], index: 1, kind: input, shape index: {}]   ;;  %s504_s2 = inlined_call_operand.vmem [shape: f32[1,128], index: 2, kind: input, shape index: {}]   ;;  %s505_s3 = inlined_call_operand.vmem [shape: bf16[128,128], index: 3, kind: input, shape index: {}]   ;;  %s506_s0 = inlined_call_operand.vmem [shape: f32[128,128], index: 0, kind: input, shape index: {}]   ;;  %s507_s4 = inlined_call_operand.vmem [shape: bf16[128,128], index: 4, kind: output, shape index: {0}]   ;;  %s508_s5 = inlined_call_operand.vmem [shape: f32[1,2,128], index: 5, kind: output, shape index: {1}]  }
   0x1   :  { %v296_v0 = vld [vmem:[%s505_s3 + $0x38] sm:$0xff]  ;;  %v295_v1 = vld [vmem:[%s505_s3 + $0x30] sm:$0xff]  ;;  %v294_v2 = vld [vmem:[%s505_s3 + $0x28] sm:$0xff] }
   0x2   :  { %107 = vmatpush.bf16.msra.mxu0 %v296_v0  ;;  %344 = vmatpush.bf16.msra.mxu1 %v296_v0  ;;  %v293_v3 = vld [vmem:[%s505_s3 + $0x20] sm:$0xff]  ;;  %v292_v4 = vld [vmem:[%s505_s3 + $0x18] sm:$0xff]  ;;  %v291_v5 = vld [vmem:[%s505_s3 + $0x10] sm:$0xff] }
   0x3   :  { %345 = vmatpush.bf16.msra.mxu2 %v296_v0  ;;  %346 = vmatpush.bf16.msra.mxu3 %v296_v0  ;;  %v290_v6 = vld [vmem:[%s505_s3 + $0x8] sm:$0xff]  ;;  %v289_v7 = vld [vmem:[%s505_s3] sm:$0xff]  ;;  %v21_v20 = vld [vmem:[%s506_s0 + $0x10] sm:$0xff] }
   0x4   :  { %v19_v8 = vld [vmem:[%s506_s0] sm:$0xff]  ;;  %v20_v9 = vld [vmem:[%s506_s0 + $0x8] sm:$0xff]  ;;  %v22_v21 = vld [vmem:[%s506_s0 + $0x18] sm:$0xff] }
   0x5   :  { %v23_v10 = vld [vmem:[%s506_s0 + $0x20] sm:$0xff]  ;;  %v24_v11 = vld [vmem:[%s506_s0 + $0x28] sm:$0xff]  ;;  %v35_v16 = vpack.c.bf16 %v20_v9, %v19_v8  ;;  %v25_v22 = vld [vmem:[%s506_s0 + $0x30] sm:$0xff]  ;;  %v36_v28 = vpack.c.bf16 %v22_v21, %v21_v20 }
   0x6   :  { %108 = vmatpush.bf16.msra.mxu0 %v295_v1  ;;  %347 = vmatpush.bf16.msra.mxu1 %v295_v1  ;;  %v27_v12 = vld [vmem:[%s506_s0 + $0x40] sm:$0xff]  ;;  %v28_v13 = vld [vmem:[%s506_s0 + $0x48] sm:$0xff]  ;;  %v37_v17 = vpack.c.bf16 %v24_v11, %v23_v10  ;;  %v26_v23 = vld [vmem:[%s506_s0 + $0x38] sm:$0xff] }
   0x7   :  { %348 = vmatpush.bf16.msra.mxu2 %v295_v1  ;;  %349 = vmatpush.bf16.msra.mxu3 %v295_v1  ;;  %v31_v14 = vld [vmem:[%s506_s0 + $0x60] sm:$0xff]  ;;  %v32_v15 = vld [vmem:[%s506_s0 + $0x68] sm:$0xff]  ;;  %v39_v18 = vpack.c.bf16 %v28_v13, %v27_v12  ;;  %v29_v24 = vld [vmem:[%s506_s0 + $0x50] sm:$0xff]  ;;  %v38_v29 = vpack.c.bf16 %v26_v23, %v25_v22 }
   0x8   :  { %v41_v19 = vpack.c.bf16 %v32_v15, %v31_v14  ;;  %v30_v25 = vld [vmem:[%s506_s0 + $0x58] sm:$0xff]  ;;  %v33_v26 = vld [vmem:[%s506_s0 + $0x70] sm:$0xff] }
   0x9   :  { %v34_v27 = vld [vmem:[%s506_s0 + $0x78] sm:$0xff]  ;;  %v40_v30 = vpack.c.bf16 %v30_v25, %v29_v24 }
   0xa   :  { %109 = vmatpush.bf16.msra.mxu0 %v294_v2  ;;  %350 = vmatpush.bf16.msra.mxu1 %v294_v2  ;;  %v42_v31 = vpack.c.bf16 %v34_v27, %v33_v26 }
   0xb   :  { %351 = vmatpush.bf16.msra.mxu2 %v294_v2  ;;  %352 = vmatpush.bf16.msra.mxu3 %v294_v2 }
   0xe   :  { %110 = vmatpush.bf16.msra.mxu0 %v293_v3  ;;  %353 = vmatpush.bf16.msra.mxu1 %v293_v3 }
   0xf   :  { %354 = vmatpush.bf16.msra.mxu2 %v293_v3  ;;  %355 = vmatpush.bf16.msra.mxu3 %v293_v3 }
  0x12   :  { %111 = vmatpush.bf16.msra.mxu0 %v292_v4  ;;  %356 = vmatpush.bf16.msra.mxu1 %v292_v4 }
  0x13   :  { %357 = vmatpush.bf16.msra.mxu2 %v292_v4  ;;  %358 = vmatpush.bf16.msra.mxu3 %v292_v4 }
  0x16   :  { %112 = vmatpush.bf16.msra.mxu0 %v291_v5  ;;  %359 = vmatpush.bf16.msra.mxu1 %v291_v5 }
  0x17   :  { %360 = vmatpush.bf16.msra.mxu2 %v291_v5  ;;  %361 = vmatpush.bf16.msra.mxu3 %v291_v5 }
  0x1a   :  { %113 = vmatpush.bf16.msra.mxu0 %v290_v6  ;;  %362 = vmatpush.bf16.msra.mxu1 %v290_v6 }
  0x1b   :  { %363 = vmatpush.bf16.msra.mxu2 %v290_v6  ;;  %364 = vmatpush.bf16.msra.mxu3 %v290_v6 }
  0x1e   :  { %114 = vmatpush.bf16.msra.mxu0 %v289_v7  ;;  %365 = vmatpush.bf16.msra.mxu1 %v289_v7 }
  0x1f   :  { %366 = vmatpush.bf16.msra.mxu2 %v289_v7  ;;  %367 = vmatpush.bf16.msra.mxu3 %v289_v7 }
  0x21   :  { %115 = vmatmul.bf16.vlgmr.msra.gmra.mxu0 %v35_v16  ;;  %125 = vmatmul.bf16.vlgmr.msra.gmra.mxu1 %v37_v17 }
  0x22   :  { %135 = vmatmul.bf16.vlgmr.msra.gmra.mxu2 %v39_v18  ;;  %145 = vmatmul.bf16.vlgmr.msra.gmra.mxu3 %v41_v19 }
  0x31   :  { %120 = vmatmul.bf16.gmra.mxu0 %v36_v28  ;;  %130 = vmatmul.bf16.gmra.mxu1 %v38_v29 }
  0x32   :  { %140 = vmatmul.bf16.gmra.mxu2 %v40_v30  ;;  %150 = vmatmul.bf16.gmra.mxu3 %v42_v31 }
  0x9e   :  { %v116_v32 = vpop.f32.mrf.mxu0  ;;  %v126_v33 = vpop.f32.mrf.mxu1 }
  0x9f   :  { %v209_v47 = vmul.f32 %v116_v32, %v116_v32  ;;  %v213_v61 = vmul.f32 %v126_v33, %v126_v33 }
  0xa5   :  { %v136_v34 = vpop.f32.mrf.mxu2  ;;  %v470_v35 = vpop.f32.mrf.mxu3 }
  0xa6   :  { %v118_v36 = vpop.f32.mrf.mxu0  ;;  %v128_v37 = vpop.f32.mrf.mxu1  ;;  %v217_v13 = vmul.f32 %v136_v34, %v136_v34  ;;  %v221_v25 = vmul.f32 %v470_v35, %v470_v35 }
  0xa7   :  { %v300_v38 = vpack.c.bf16 %v118_v36, %v116_v32  ;;  %v310_v39 = vpack.c.bf16 %v128_v37, %v126_v33  ;;  %v210_v46 = vmul.f32 %v118_v36, %v118_v36  ;;  %v188_v49 = vadd.f32 %v118_v36, %v116_v32 }
  0xa8   :  { %v214_v0 = vmul.f32 %v128_v37, %v128_v37 }
  0xa9   :  { %301 = vst [vmem:[%s507_s4] sm:$0xff] %v300_v38   ;;  %v225_v50 = vadd.f32 %v210_v46, %v209_v47 }
  0xaa   :  { %338 = vst [vmem:[%s507_s4 + $0x10] sm:$0xff] %v310_v39  }
  0xad   :  { %v138_v40 = vpop.f32.mrf.mxu2  ;;  %v148_v41 = vpop.f32.mrf.mxu3 }
  0xae   :  { %v121_v42 = vpop.f32.mrf.mxu0  ;;  %v131_v43 = vpop.f32.mrf.mxu1  ;;  %v320_v44 = vpack.c.bf16 %v138_v40, %v136_v34  ;;  %v330_v45 = vpack.c.bf16 %v148_v41, %v470_v35  ;;  %v218_v16 = vmul.f32 %v138_v40, %v138_v40  ;;  %v222_v28 = vmul.f32 %v148_v41, %v148_v41 }
  0xaf   :  { %v211_v48 = vmul.f32 %v121_v42, %v121_v42  ;;  %v189_v51 = vadd.f32 %v188_v49, %v121_v42  ;;  %v215_v3 = vmul.f32 %v131_v43, %v131_v43 }
  0xb0   :  { %340 = vst [vmem:[%s507_s4 + $0x20] sm:$0xff] %v320_v44  }
  0xb1   :  { %342 = vst [vmem:[%s507_s4 + $0x30] sm:$0xff] %v330_v45   ;;  %v226_v54 = vadd.f32 %v225_v50, %v211_v48 }
  0xb5   :  { %v141_v52 = vpop.f32.mrf.mxu2  ;;  %v151_v53 = vpop.f32.mrf.mxu3 }
  0xb6   :  { %v123_v55 = vpop.f32.mrf.mxu0  ;;  %v133_v56 = vpop.f32.mrf.mxu1  ;;  %v219_v20 = vmul.f32 %v141_v52, %v141_v52  ;;  %v223_v32 = vmul.f32 %v151_v53, %v151_v53 }
  0xb7   :  { %v305_v57 = vpack.c.bf16 %v123_v55, %v121_v42  ;;  %v190_v58 = vadd.f32 %v189_v51, %v123_v55  ;;  %v212_v59 = vmul.f32 %v123_v55, %v123_v55  ;;  %v315_v60 = vpack.c.bf16 %v133_v56, %v131_v43 }
  0xb8   :  { %v216_v11 = vmul.f32 %v133_v56, %v133_v56 }
  0xb9   :  { %337 = vst [vmem:[%s507_s4 + $0x8] sm:$0xff] %v305_v57   ;;  %v191_v62 = vadd.f32 %v190_v58, %v126_v33  ;;  %v227_v63 = vadd.f32 %v226_v54, %v212_v59 }
  0xba   :  { %339 = vst [vmem:[%s507_s4 + $0x18] sm:$0xff] %v315_v60  }
  0xbb   :  { %v228_v1 = vadd.f32 %v227_v63, %v213_v61  ;;  %v192_v2 = vadd.f32 %v191_v62, %v128_v37 }
  0xbd   :  { %v193_v4 = vadd.f32 %v192_v2, %v131_v43  ;;  %v229_v5 = vadd.f32 %v228_v1, %v214_v0  ;;  %v143_v6 = vpop.f32.mrf.mxu2  ;;  %v153_v7 = vpop.f32.mrf.mxu3 }
  0xbe   :  { %v325_v8 = vpack.c.bf16 %v143_v6, %v141_v52  ;;  %v335_v9 = vpack.c.bf16 %v153_v7, %v151_v53  ;;  %v220_v24 = vmul.f32 %v143_v6, %v143_v6  ;;  %v224_v37 = vmul.f32 %v153_v7, %v153_v7 }
  0xbf   :  { %v194_v10 = vadd.f32 %v193_v4, %v133_v56  ;;  %v230_v12 = vadd.f32 %v229_v5, %v215_v3 }
  0xc0   :  { %341 = vst [vmem:[%s507_s4 + $0x28] sm:$0xff] %v325_v8  }
  0xc1   :  { %v195_v14 = vadd.f32 %v194_v10, %v136_v34  ;;  %v231_v15 = vadd.f32 %v230_v12, %v216_v11  ;;  %343 = vst [vmem:[%s507_s4 + $0x38] sm:$0xff] %v335_v9  }
  0xc3   :  { %v232_v17 = vadd.f32 %v231_v15, %v217_v13  ;;  %v196_v18 = vadd.f32 %v195_v14, %v138_v40 }
  0xc5   :  { %v197_v19 = vadd.f32 %v196_v18, %v141_v52  ;;  %v233_v21 = vadd.f32 %v232_v17, %v218_v16 }
  0xc7   :  { %v234_v22 = vadd.f32 %v233_v21, %v219_v20  ;;  %v198_v23 = vadd.f32 %v197_v19, %v143_v6 }
  0xc9   :  { %v199_v26 = vadd.f32 %v198_v23, %v470_v35  ;;  %v235_v27 = vadd.f32 %v234_v22, %v220_v24 }
  0xcb   :  { %v236_v29 = vadd.f32 %v235_v27, %v221_v25  ;;  %v200_v30 = vadd.f32 %v199_v26, %v148_v41 }
  0xcd   :  { %v201_v31 = vadd.f32 %v200_v30, %v151_v53  ;;  %v237_v33 = vadd.f32 %v236_v29, %v222_v28 }
  0xcf   :  { %v238_v34 = vadd.f32 %v237_v33, %v223_v32  ;;  %v202_v36 = vadd.f32 %v201_v31, %v153_v7 }
  0xd1   :  { %v203_v38 = vrot.slane %v202_v36, 4  ;;  %v239_v39 = vadd.f32 %v238_v34, %v224_v37 }
  0xd3   :  { %v204_v40 = vadd.f32 %v203_v38, %v202_v36  ;;  %v240_v42 = vrot.slane %v239_v39, 4 }
  0xd5   :  { %v205_v43 = vrot.slane %v204_v40, 2  ;;  %v241_v44 = vadd.f32 %v240_v42, %v239_v39 }
  0xd7   :  { %v206_v45 = vadd.f32 %v205_v43, %v204_v40  ;;  %v242_v46 = vrot.slane %v241_v44, 2 }
  0xd9   :  { %v207_v47 = vrot.slane %v206_v45, 1  ;;  %v243_v35 = vadd.f32 %v242_v46, %v241_v44 }
  0xdb   :  { %v244_v48 = vrot.slane %v243_v35, 1  ;;  %v208_v49 = vadd.f32 %v207_v47, %v206_v45 }
  0xdd   :  { %v245_v41 = vadd.f32 %v244_v48, %v243_v35 }
  0xdf   :  { %v247_v50 = vsel %vm246_vm0, %v208_v49, %v245_v41 }
  0xe0   :  { %248 = vst [vmem:[%s508_s5] sm:$0x3] %v247_v50 }

// kernel: bottleneck_forward.5
= control target key start
LH: loop header
LB: loop body
LE: loop exit
PB: predicated region body
PF: predicated region fallthrough
CT: control target
= control target key end

     0   :  { %s2595_s18 = smov 0   ;;  %s3262_s0 = inlined_call_operand.vmem [shape: bf16[2,8,8,128], index: 0, kind: input, shape index: {}]   ;;  %s3263_s1 = inlined_call_operand.vmem [shape: f32[1,128], index: 1, kind: input, shape index: {}]   ;;  %s3264_s2 = inlined_call_operand.vmem [shape: f32[1,128], index: 2, kind: input, shape index: {}]   ;;  %s3265_s3 = inlined_call_operand.vmem [shape: bf16[3,384,128], index: 3, kind: input, shape index: {}]   ;;  %s3266_s4 = inlined_call_operand.vmem [shape: bf16[2,8,8,128], index: 4, kind: output, shape index: {0}]   ;;  %s3267_s5 = inlined_call_operand.vmem [shape: f32[2,2,128], index: 5, kind: output, shape index: {1}]  }
   0x1 LB: > { %s2017_s19 = sadd.s32 4294967295, %s2562_s18   ;;  %p2021_p0 = scmp.ge.s32.totalorder %s2562_s18, 1  ;;  %s2562_s18 = sphi %s2595_s18, %s16_s18  }
   0x2   : > { %p190_p1 = scmp.lt.s32.totalorder %s2562_s18, 3 }
   0x4   : > { %p191_p2 = pnand %p2021_p0, %p190_p1 }
   0x5   : > { %p222_p3 = scmp.lt.s32.totalorder (!%p191_p2), %s2017_s19, 1 }
   0x6   : > { %194 = sbr.rel (%p191_p2) target bundleno = 356 (0x164), region = 36 }
   0xb   : > { %v2422_v0 = vld [vmem:[%s3265_s3 + $0x38] sm:$0xff]  ;;  %v2564_v3 = vmov 0   ;;  %v2421_v4 = vld [vmem:[%s3265_s3 + $0x30] sm:$0xff]  ;;  %s3275_s19 = smov (!%p222_p3, %s2017_s19), 1  ;;  %vm290_vm0 = vcmask 1040384   ;;  %v2420_v7 = vld [vmem:[%s3265_s3 + $0x28] sm:$0xff] }
   0xc   : > { %v2438_v1 = vld [vmem:[%s3265_s3 + $0xb8] sm:$0xff]  ;;  %285 = vst [vmem:[#allocation2] sm:$0xf] %v2564_v3  ;;  %846 = vmatpush.bf16.msra.mxu0 %v2422_v0  ;;  %2529 = vmatpush.bf16.msra.mxu1 %v2422_v0  ;;  %v2437_v5 = vld [vmem:[%s3265_s3 + $0xb0] sm:$0xff]  ;;  %s2413_s7 = sshll.u32 %s3275_s19, 5  ;;  %v2436_v8 = vld [vmem:[%s3265_s3 + $0xa8] sm:$0xff] }
   0xd   : > { %v2446_v2 = vld [vmem:[%s3265_s3 + $0xf8] sm:$0xff]  ;;  %286 = vst [vmem:[#allocation2 + $0x4] sm:$0x1] %v2564_v3  ;;  %904 = vmatpush.bf16.msra.mxu2 %v2438_v1  ;;  %v2445_v6 = vld [vmem:[%s3265_s3 + $0xf0] sm:$0xff]  ;;  %s2629_s10 = scalar_lea.vmem %s3262_s0, %s2413_s7  ;;  %vm291_vm1 = vsmask.f32 256  ;;  %s3234_s20 = scalar_lea.vmem %s3266_s4, %s2413_s7 }
   0xe   : > { %1294 = vmatpush.bf16.msra.mxu3 %v2446_v2  ;;  %288 = vst [vmem:[#allocation2 + $0x48] sm:$0xf] %v2564_v3  ;;  %v2444_v9 = vld [vmem:[%s3265_s3 + $0xe8] sm:$0xff]  ;;  %v2488_v10 = vld [vmem:[%s2629_s10] sm:$0xff]   ;;  %vm323_vm2 = vsmask.f32 7938  ;;  %vm2661_vm3 = vmand %vm290_vm0, %vm291_vm1 }
   0xf   : > { %289 = vst [vmem:[#allocation2 + $0x4c] sm:$0x1] %v2564_v3  ;;  %v2419_v11 = vld [vmem:[%s3265_s3 + $0x20] sm:$0xff]  ;;  %v2489_v12 = vunpack.c.l.bf16 %v2488_v10  ;;  %v2490_v15 = vunpack.c.h.bf16 %v2488_v10  ;;  %v296_v20 = vld [vmem:[#allocation2 + $0x8] sm:$0x1]  ;;  %vm2672_vm4 = vmand %vm290_vm0, %vm323_vm2  ;;  %vm444_vm5 = vcmask 1043456  }
  0x10   : > { %847 = vmatpush.bf16.msra.mxu0 %v2421_v4  ;;  %2530 = vmatpush.bf16.msra.mxu1 %v2421_v4  ;;  %v2647_v13 = vld [vmem:[%s3263_s1] ss:$0 sm:$0xff]  ;;  %v297_v23 = vsel %vm2661_vm3, 0, %v296_v20  ;;  %v328_v26 = vld [vmem:[#allocation2 + $0xc] sm:$0x1]  ;;  %v2524_v31 = vld [vmem:[%s2629_s10 + $0x10] sm:$0xff]  }
  0x11   : > { %905 = vmatpush.bf16.msra.mxu2 %v2437_v5  ;;  %v2652_v14 = vld [vmem:[%s3264_s2] ss:$0 sm:$0xff]  ;;  %v257_v21 = vmul.f32 %v2647_v13, %v2489_v12  ;;  %v258_v27 = vmul.f32 %v2647_v13, %v2490_v15  ;;  %v329_v29 = vsel %vm2672_vm4, 0, %v328_v26  ;;  %v2523_v30 = vld [vmem:[%s2629_s10 + $0x8] sm:$0xff]   ;;  %v2418_v32 = vld [vmem:[%s3265_s3 + $0x18] sm:$0xff]  ;;  %v2497_v35 = vunpack.c.l.bf16 %v2524_v31  ;;  %s2026_s7 = sshll.u32 %s3275_s19, 1 }
  0x12   : > { %1295 = vmatpush.bf16.msra.mxu3 %v2445_v6  ;;  %v2435_v16 = vld [vmem:[%s3265_s3 + $0xa0] sm:$0xff]  ;;  %298 = vst [vmem:[#allocation2 + $0x8] sm:$0x1] %v297_v23  ;;  %v2494_v34 = vunpack.c.h.bf16 %v2523_v30  ;;  %v308_v37 = vld [vmem:[#allocation2 + $0x28] sm:$0x1]  ;;  %v2493_v42 = vunpack.c.l.bf16 %v2523_v30  ;;  %v2434_v48 = vld [vmem:[%s3265_s3 + $0x98] sm:$0xff]  ;;  %v2498_v52 = vunpack.c.h.bf16 %v2524_v31  ;;  %s235_s23 = scalar_lea.vmem %s3267_s5, %s2026_s7 }
  0x13   : > { %v2443_v17 = vld [vmem:[%s3265_s3 + $0xe0] sm:$0xff]  ;;  %v269_v33 = vadd.f32 %v2652_v14, %v257_v21  ;;  %v270_v38 = vadd.f32 %v2652_v14, %v258_v27  ;;  %v309_v40 = vsel %vm2661_vm3, 0, %v308_v37  ;;  %330 = vst [vmem:[#allocation2 + $0xc] sm:$0x1] %v329_v29  ;;  %v261_v45 = vmul.f32 %v2647_v13, %v2497_v35  ;;  %v340_v47 = vld [vmem:[#allocation2 + $0x2c] sm:$0x1]  ;;  %vm2726_vm6 = vmand %vm444_vm5, %vm323_vm2 }
  0x14   : > { %v293_v19 = vld [vmem:[#allocation2] sm:$0x1]  ;;  %848 = vmatpush.bf16.msra.mxu0 %v2420_v7  ;;  %2531 = vmatpush.bf16.msra.mxu1 %v2420_v7  ;;  %v325_v25 = vld [vmem:[#allocation2 + $0x4] sm:$0x1]  ;;  %v260_v44 = vmul.f32 %v2647_v13, %v2494_v34  ;;  %v2442_v49 = vld [vmem:[%s3265_s3 + $0xd8] sm:$0xff]  ;;  %v341_v50 = vsel %vm2672_vm4, 0, %v340_v47  ;;  %v259_v51 = vmul.f32 %v2647_v13, %v2493_v42  ;;  %v262_v7 = vmul.f32 %v2647_v13, %v2498_v52 }
  0x15   : > { %v294_v22 = vsel %vm2661_vm3, 0, %v293_v19  ;;  %906 = vmatpush.bf16.msra.mxu2 %v2436_v8  ;;  %v326_v28 = vsel %vm2672_vm4, 0, %v325_v25  ;;  %v305_v36 = vld [vmem:[#allocation2 + $0x20] sm:$0x1]  ;;  %v337_v41 = vld [vmem:[#allocation2 + $0x24] sm:$0x1]  ;;  %v273_v56 = vadd.f32 %v2652_v14, %v261_v45 }
  0x16   : > { %1296 = vmatpush.bf16.msra.mxu3 %v2444_v9  ;;  %295 = vst [vmem:[#allocation2] sm:$0x1] %v294_v22  ;;  %v306_v39 = vsel %vm2661_vm3, 0, %v305_v36  ;;  %v277_v43 = vmax.f32 %v269_v33, 0.0  ;;  %v338_v46 = vsel %vm2672_vm4, 0, %v337_v41  ;;  %v2417_v53 = vld [vmem:[%s3265_s3 + $0x10] sm:$0xff]  ;;  %v272_v55 = vadd.f32 %v2652_v14, %v260_v44 }
  0x17   : > { %327 = vst [vmem:[#allocation2 + $0x4] sm:$0x1] %v326_v28  ;;  %v278_v57 = vmax.f32 %v270_v38, 0.0  ;;  %v2433_v58 = vld [vmem:[%s3265_s3 + $0x90] sm:$0xff]  ;;  %v281_v2 = vmax.f32 %v273_v56, 0.0  ;;  %v271_v12 = vadd.f32 %v2652_v14, %v259_v51  ;;  %v2416_v22 = vld [vmem:[%s3265_s3 + $0x8] sm:$0xff] }
  0x18   : > { %849 = vmatpush.bf16.msra.mxu0 %v2419_v11  ;;  %2532 = vmatpush.bf16.msra.mxu1 %v2419_v11  ;;  %307 = vst [vmem:[#allocation2 + $0x20] sm:$0x1] %v306_v39  ;;  %v355_v54 = vpack.c.bf16 %v277_v43, %v277_v43  ;;  %v2441_v59 = vld [vmem:[%s3265_s3 + $0xd0] sm:$0xff]  ;;  %v280_v1 = vmax.f32 %v272_v55, 0.0  ;;  %v2432_v28 = vld [vmem:[%s3265_s3 + $0x88] sm:$0xff]  ;;  %v2415_v33 = vld [vmem:[%s3265_s3] sm:$0xff] }
  0x19   : > { %907 = vmatpush.bf16.msra.mxu2 %v2435_v16  ;;  %310 = vst [vmem:[#allocation2 + $0x28] sm:$0x1] %v309_v40  ;;  %v299_v60 = vld [vmem:[#allocation2 + $0x10] sm:$0x1]  ;;  %v331_v61 = vld [vmem:[#allocation2 + $0x14] sm:$0x1]  ;;  %v356_v6 = vpack.c.bf16 %v278_v57, %v278_v57  ;;  %v359_v11 = vpack.c.bf16 %v281_v2, %v281_v2 }
  0x1a   : > { %1297 = vmatpush.bf16.msra.mxu3 %v2443_v17  ;;  %339 = vst [vmem:[#allocation2 + $0x24] sm:$0x1] %v338_v46  ;;  %v364_v62 = vshrl.u32 %v355_v54, 16  ;;  %v367_v63 = vshll.u32 %v355_v54, 16  ;;  %v446_v3 = vld [vmem:[#allocation2 + $0x8] sm:$0xf]  ;;  %v358_v10 = vpack.c.bf16 %v280_v1, %v280_v1  ;;  %v274_v46 = vadd.f32 %v2652_v14, %v262_v7 }
  0x1b   : > { %342 = vst [vmem:[#allocation2 + $0x2c] sm:$0x1] %v341_v50  ;;  %v300_v4 = vsel %vm2661_vm3, 0, %v299_v60  ;;  %v332_v5 = vsel %vm2672_vm4, 0, %v331_v61  ;;  %v449_v16 = vld [vmem:[#allocation2 + $0xc] sm:$0x1] }
  0x1c   : > { %850 = vmatpush.bf16.msra.mxu0 %v2418_v32  ;;  %2533 = vmatpush.bf16.msra.mxu1 %v2418_v32  ;;  %v366_v8 = vrot.slane %v364_v62, 7  ;;  %301 = vst [vmem:[#allocation2 + $0x10] sm:$0x1] %v300_v4  ;;  %v372_v20 = vshrl.u32 %v356_v6, 16  ;;  %v375_v21 = vshll.u32 %v356_v6, 16  ;;  %v388_v26 = vshrl.u32 %v358_v10, 16 }
  0x1d   : > { %v2716_v0 = vld [vmem:[#allocation2] sm:$0xf]  ;;  %908 = vmatpush.bf16.msra.mxu2 %v2434_v48  ;;  %333 = vst [vmem:[#allocation2 + $0x14] sm:$0x1] %v332_v5  ;;  %v391_v27 = vshll.u32 %v358_v10, 16  ;;  %v2440_v29 = vld [vmem:[%s3265_s3 + $0xc8] sm:$0xff] }
  0x1e   : > { %1298 = vmatpush.bf16.msra.mxu3 %v2442_v49  ;;  %v495_v9 = vld [vmem:[#allocation2 + $0x4] sm:$0x1]  ;;  %v526_v17 = vunpack.c.l.b16 %v2716_v0  ;;  %v369_v23 = vor.u32 %v367_v63, %v366_v8  ;;  %v370_v25 = vrot.slane %v366_v8, 4  ;;  %v396_v30 = vshrl.u32 %v359_v11, 16  ;;  %v2430_v43 = vld [vmem:[%s3265_s3 + $0x78] sm:$0xff]  ;;  %v2453_v4 = vld [vmem:[%s3265_s3 + $0x130] sm:$0xff] }
  0x1f   : > { %v527_v19 = vunpack.c.l.b16 %v495_v9  ;;  %v399_v31 = vshll.u32 %v359_v11, 16  ;;  %v374_v32 = vrot.slane %v372_v20, 7  ;;  %v390_v36 = vrot.slane %v388_v26, 7  ;;  %v464_v37 = vld [vmem:[#allocation2 + $0x20] sm:$0xf]  ;;  %v2454_v44 = vld [vmem:[%s3265_s3 + $0x138] sm:$0xff] }
  0x20   : > { %851 = vmatpush.bf16.msra.mxu0 %v2417_v53  ;;  %2534 = vmatpush.bf16.msra.mxu1 %v2417_v53  ;;  %v447_v34 = vsel %vm2726_vm6, %v369_v23, %v446_v3  ;;  %v450_v35 = vsel %vm2661_vm3, %v370_v25, %v449_v16  ;;  %v470_v38 = vld [vmem:[#allocation2 + $0x28] sm:$0xf]  ;;  %v279_v39 = vmax.f32 %v271_v12, 0.0  ;;  %v398_v41 = vrot.slane %v396_v30, 7  ;;  %v2758_v45 = vld [vmem:[%s2629_s10 + $0x18] sm:$0xff]   ;;  %v2431_v50 = vld [vmem:[%s3265_s3 + $0x80] sm:$0xff] }
  0x21   : > { %909 = vmatpush.bf16.msra.mxu2 %v2433_v58  ;;  %448 = vst [vmem:[#allocation2 + $0x8] sm:$0xf] %v447_v34  ;;  %v2749_v40 = vpack.c.b16 %v527_v19, %v526_v17  ;;  %v467_v42 = vld [vmem:[#allocation2 + $0x24] sm:$0x1]  ;;  %v393_v47 = vor.u32 %v391_v27, %v390_v36  ;;  %v394_v48 = vrot.slane %v390_v36, 4  ;;  %v377_v51 = vor.u32 %v375_v21, %v374_v32  ;;  %v2429_v3 = vld [vmem:[%s3265_s3 + $0x70] sm:$0xff] }
  0x22   : > { %1299 = vmatpush.bf16.msra.mxu3 %v2441_v59  ;;  %451 = vst [vmem:[#allocation2 + $0xc] sm:$0x1] %v450_v35  ;;  %v473_v49 = vld [vmem:[#allocation2 + $0x2c] sm:$0x1]  ;;  %v2501_v52 = vunpack.c.l.bf16 %v2758_v45  ;;  %v401_v53 = vor.u32 %v399_v31, %v398_v41  ;;  %v402_v54 = vrot.slane %v398_v41, 4  ;;  %v378_v55 = vrot.slane %v374_v32, 4 }
  0x23   : > { %v452_v56 = vld [vmem:[#allocation2 + $0x10] sm:$0xf]  ;;  %v302_v57 = vld [vmem:[#allocation2 + $0x18] sm:$0x1]  ;;  %v2765_v58 = vpack.c.bf16 %v279_v39, %v279_v39  ;;  %v465_v59 = vsel %vm2726_vm6, %v393_v47, %v464_v37  ;;  %v468_v60 = vsel %vm2661_vm3, %v394_v48, %v467_v42  ;;  %v2439_v61 = vld [vmem:[%s3265_s3 + $0xc0] sm:$0xff]  ;;  %v606_v5 = vrot.slane %v2749_v40, 1 }
  0x24   : > { %852 = vmatpush.bf16.msra.mxu0 %v2416_v22  ;;  %2535 = vmatpush.bf16.msra.mxu1 %v2416_v22  ;;  %v455_v62 = vld [vmem:[#allocation2 + $0x14] sm:$0x1]  ;;  %v334_v63 = vld [vmem:[#allocation2 + $0x1c] sm:$0x1]  ;;  %466 = vst [vmem:[#allocation2 + $0x20] sm:$0xf] %v465_v59  ;;  %v471_v1 = vsel %vm2726_vm6, %v401_v53, %v470_v38  ;;  %v474_v2 = vsel %vm2661_vm3, %v402_v54, %v473_v49 }
  0x25   : > { %910 = vmatpush.bf16.msra.mxu2 %v2432_v28  ;;  %v2470_v6 = vld [vmem:[%s3265_s3 + $0x1b8] sm:$0xff]  ;;  %v282_v7 = vmax.f32 %v274_v46, 0.0  ;;  %469 = vst [vmem:[#allocation2 + $0x24] sm:$0x1] %v468_v60  ;;  %v453_v8 = vsel %vm2726_vm6, %v377_v51, %v452_v56  ;;  %v303_v9 = vsel %vm2661_vm3, 0, %v302_v57  ;;  %v335_v10 = vsel %vm2672_vm4, 0, %v334_v63 }
  0x26   : > { %1300 = vmatpush.bf16.msra.mxu3 %v2440_v29  ;;  %v263_v11 = vmul.f32 %v2647_v13, %v2501_v52  ;;  %v311_v12 = vld [vmem:[#allocation2 + $0x30] sm:$0x1]  ;;  %472 = vst [vmem:[#allocation2 + $0x28] sm:$0xf] %v471_v1  ;;  %v456_v16 = vsel %vm2661_vm3, %v378_v55, %v455_v62  ;;  %v380_v19 = vshrl.u32 %v2765_v58, 16  ;;  %v383_v20 = vshll.u32 %v2765_v58, 16 }
  0x27   : > { %v314_v21 = vld [vmem:[#allocation2 + $0x38] sm:$0x1]  ;;  %475 = vst [vmem:[#allocation2 + $0x2c] sm:$0x1] %v474_v2  ;;  %v343_v25 = vld [vmem:[#allocation2 + $0x34] sm:$0x1]  ;;  %v360_v30 = vpack.c.bf16 %v282_v7, %v282_v7 }
  0x28   : > { %853 = vmatpush.bf16.msra.mxu0 %v2415_v33  ;;  %2536 = vmatpush.bf16.msra.mxu1 %v2415_v33  ;;  %v496_v22 = vld [vmem:[#allocation2 + $0x8] sm:$0xf]  ;;  %v275_v23 = vadd.f32 %v2652_v14, %v263_v11  ;;  %454 = vst [vmem:[#allocation2 + $0x10] sm:$0xf] %v453_v8  ;;  %v312_v33 = vsel %vm2661_vm3, 0, %v311_v12  ;;  %v382_v37 = vrot.slane %v380_v19, 7 }
  0x29   : > { %911 = vmatpush.bf16.msra.mxu2 %v2431_v50  ;;  %v497_v26 = vld [vmem:[#allocation2 + $0xc] sm:$0x1]  ;;  %v528_v27 = vunpack.c.l.b16 %v496_v22  ;;  %v2800_v28 = vld [vmem:[#allocation2 + $0x8] sm:$0xf]  ;;  %457 = vst [vmem:[#allocation2 + $0x14] sm:$0x1] %v456_v16  ;;  %v615_v50 = vunpack.c.l.b16 %v606_v5 }
  0x2a   : > { %1301 = vmatpush.bf16.msra.mxu3 %v2439_v61  ;;  %v2428_v29 = vld [vmem:[%s3265_s3 + $0x68] sm:$0xff]  ;;  %v529_v31 = vunpack.c.l.b16 %v497_v26  ;;  %v283_v32 = vmax.f32 %v275_v23, 0.0  ;;  %v346_v34 = vld [vmem:[#allocation2 + $0x3c] sm:$0x1]  ;;  %304 = vst [vmem:[#allocation2 + $0x18] sm:$0x1] %v303_v9  ;;  %v973_v51 = vunpack.c.l.b16 %v2800_v28  ;;  %v385_v54 = vor.u32 %v383_v20, %v382_v37 }
  0x2b   : > { %v678_v35 = vpack.c.b16 %v528_v27, %v526_v17  ;;  %v2452_v36 = vld [vmem:[%s3265_s3 + $0x128] sm:$0xff]  ;;  %v315_v38 = vsel %vm2661_vm3, 0, %v314_v21  ;;  %v344_v39 = vsel %vm2672_vm4, 0, %v343_v25  ;;  %v2818_v42 = vld [vmem:[#allocation2 + $0x20] sm:$0xf]  ;;  %v347_v0 = vsel %vm2672_vm4, 0, %v346_v34 }
  0x2c   : > { %875 = vmatpush.bf16.msrb.mxu1 %v2430_v43  ;;  %1323 = vmatpush.bf16.msrb.mxu0 %v2454_v44  ;;  %v2816_v41 = vpack.c.b16 %v529_v31, %v528_v27  ;;  %336 = vst [vmem:[#allocation2 + $0x1c] sm:$0x1] %v335_v10  ;;  %v2469_v17 = vld [vmem:[%s3265_s3 + $0x1b0] sm:$0xff]  ;;  %v534_v43 = vunpack.c.l.b16 %v2818_v42  ;;  %v361_v44 = vpack.c.bf16 %v283_v32, %v283_v32  ;;  %v404_v46 = vshrl.u32 %v360_v30, 16  ;;  %v2451_v53 = vld [vmem:[%s3265_s3 + $0x120] sm:$0xff]  ;;  %v2450_v12 = vld [vmem:[%s3265_s3 + $0x118] sm:$0xff] }
  0x2d   : > { %1759 = vmatpush.bf16.msrb.mxu2 %v2470_v6  ;;  %854 = vmatmul.bf16.vlgmr.msra.gmra.mxu0 %v678_v35  ;;  %313 = vst [vmem:[#allocation2 + $0x30] sm:$0x1] %v312_v33  ;;  %v407_v47 = vshll.u32 %v360_v30, 16  ;;  %v2826_v48 = vld [vmem:[#allocation2 + $0x28] sm:$0xf]  ;;  %v2427_v59 = vld [vmem:[%s3265_s3 + $0x60] sm:$0xff] }
  0x2e   : > { %v607_v49 = vrot.slane %v2816_v41, 1  ;;  %316 = vst [vmem:[#allocation2 + $0x38] sm:$0x1] %v315_v38  ;;  %v536_v52 = vunpack.c.l.b16 %v2826_v48  ;;  %v406_v55 = vrot.slane %v404_v46, 7  ;;  %v412_v56 = vshrl.u32 %v361_v44, 16  ;;  %v2478_v16 = vld [vmem:[%s3265_s3 + $0x1f8] sm:$0xff] }
  0x2f   : > { %345 = vst [vmem:[#allocation2 + $0x34] sm:$0x1] %v344_v39  ;;  %v943_v58 = vld [vmem:[#allocation2 + $0x10] sm:$0xf]  ;;  %v386_v60 = vrot.slane %v382_v37, 4  ;;  %v2426_v25 = vld [vmem:[%s3265_s3 + $0x58] sm:$0xff]  ;;  %1788 = vmatpush.bf16.msrb.mxu3 %v2478_v16 }
  0x30   : > { %876 = vmatpush.bf16.msrb.mxu1 %v2429_v3  ;;  %1324 = vmatpush.bf16.msrb.mxu0 %v2453_v4  ;;  %v617_v57 = vunpack.c.l.b16 %v607_v49  ;;  %348 = vst [vmem:[#allocation2 + $0x3c] sm:$0x1] %v347_v0  ;;  %v684_v61 = vpack.c.b16 %v536_v52, %v534_v43  ;;  %v942_v62 = vld [vmem:[#allocation2 + $0xc] sm:$0x1]  ;;  %v944_v63 = vld [vmem:[#allocation2 + $0x14] sm:$0x1]  ;;  %v975_v1 = vunpack.c.l.b16 %v943_v58  ;;  %v409_v3 = vor.u32 %v407_v47, %v406_v55 }
  0x31   : > { %1760 = vmatpush.bf16.msrb.mxu2 %v2469_v17  ;;  %v2841_v2 = vld [vmem:[#allocation2 + $0x10] sm:$0xf]  ;;  %v458_v5 = vld [vmem:[#allocation2 + $0x18] sm:$0xf]  ;;  %v499_v6 = vld [vmem:[#allocation2 + $0x14] sm:$0x1]  ;;  %v974_v19 = vunpack.c.l.b16 %v942_v62  ;;  %v976_v20 = vunpack.c.l.b16 %v944_v63 }
  0x32   : > { %v680_v4 = vpack.c.b16 %v617_v57, %v615_v50  ;;  %864 = vmatmul.bf16.vlgmr.msra.gmra.mxu1 %v684_v61  ;;  %v1126_v7 = vpack.c.b16 %v975_v1, %v973_v51  ;;  %v459_v8 = vsel %vm2726_vm6, %v385_v54, %v458_v5  ;;  %v410_v10 = vrot.slane %v406_v55, 4  ;;  %v2468_v26 = vld [vmem:[%s3265_s3 + $0x1a8] sm:$0xff]  ;;  %v2477_v37 = vld [vmem:[%s3265_s3 + $0x1f0] sm:$0xff]  ;;  %v503_v46 = vld [vmem:[#allocation2 + $0x24] sm:$0x1] }
  0x33   : > { %v461_v9 = vld [vmem:[#allocation2 + $0x1c] sm:$0x1]  ;;  %v414_v11 = vrot.slane %v412_v56, 7  ;;  %460 = vst [vmem:[#allocation2 + $0x18] sm:$0xf] %v459_v8  ;;  %v530_v22 = vunpack.c.l.b16 %v2841_v2  ;;  %v531_v27 = vunpack.c.l.b16 %v499_v6  ;;  %v415_v28 = vshll.u32 %v361_v44, 16  ;;  %1789 = vmatpush.bf16.msrb.mxu3 %v2477_v37 }
  0x34   : > { %877 = vmatpush.bf16.msrb.mxu1 %v2428_v29  ;;  %1325 = vmatpush.bf16.msrb.mxu0 %v2452_v36  ;;  %v462_v21 = vsel %vm2661_vm3, %v386_v60, %v461_v9  ;;  %v476_v23 = vld [vmem:[#allocation2 + $0x30] sm:$0xf]  ;;  %v2870_v38 = vpack.c.b16 %v974_v19, %v973_v51  ;;  %v2872_v39 = vpack.c.b16 %v976_v20, %v975_v1  ;;  %v2467_v44 = vld [vmem:[%s3265_s3 + $0x1a0] sm:$0xff]  ;;  %v2886_v50 = vld [vmem:[#allocation2 + $0x2c] sm:$0x1]  ;;  %v553_v16 = vshll.u32 %v2749_v40, 16 }
  0x35   : > { %912 = vmatmul.bf16.vlgmr.msra.gmra.mxu2 %v680_v4  ;;  %1302 = vmatmul.bf16.vlgmr.msra.gmra.mxu3 %v1126_v7  ;;  %463 = vst [vmem:[#allocation2 + $0x1c] sm:$0x1] %v462_v21  ;;  %v418_v29 = vrot.slane %v414_v11, 4  ;;  %v477_v30 = vsel %vm2726_vm6, %v409_v3, %v476_v23  ;;  %v482_v32 = vld [vmem:[#allocation2 + $0x38] sm:$0xf]  ;;  %v417_v33 = vor.u32 %v415_v28, %v414_v11  ;;  %v2449_v36 = vld [vmem:[%s3265_s3 + $0x110] sm:$0xff]  ;;  %v535_v3 = vunpack.c.l.b16 %v503_v46 }
  0x36   : > { %478 = vst [vmem:[#allocation2 + $0x30] sm:$0xf] %v477_v30  ;;  %v479_v31 = vld [vmem:[#allocation2 + $0x34] sm:$0x1]  ;;  %1761 = vmatpush.bf16.msrb.mxu2 %v2468_v26  ;;  %v2882_v47 = vpack.c.b16 %v531_v27, %v530_v22  ;;  %v2888_v51 = vld [vmem:[#allocation2 + $0x20] sm:$0xf]  ;;  %v2502_v7 = vunpack.c.h.bf16 %v2758_v45  ;;  %v537_v8 = vunpack.c.l.b16 %v2886_v50 }
  0x37   : > { %v480_v34 = vsel %vm2661_vm3, %v410_v10, %v479_v31  ;;  %v485_v35 = vld [vmem:[#allocation2 + $0x3c] sm:$0x1]  ;;  %v2425_v17 = vld [vmem:[%s3265_s3 + $0x50] sm:$0xff]  ;;  %v483_v49 = vsel %vm2726_vm6, %v417_v33, %v482_v32  ;;  %v2448_v55 = vld [vmem:[%s3265_s3 + $0x108] sm:$0xff]  ;;  %v1007_v60 = vshll.u32 %v2872_v39, 16  ;;  %v979_v2 = vunpack.c.l.b16 %v2888_v51 }
  0x38   : > { %1326 = vmatpush.bf16.msrb.mxu0 %v2451_v53  ;;  %878 = vmatpush.bf16.msrb.mxu1 %v2427_v59  ;;  %481 = vst [vmem:[#allocation2 + $0x34] sm:$0x1] %v480_v34  ;;  %v486_v0 = vsel %vm2661_vm3, %v418_v29, %v485_v35  ;;  %v2424_v58 = vld [vmem:[%s3265_s3 + $0x48] sm:$0xff]  ;;  %v1000_v59 = vshll.u32 %v2870_v38, 16  ;;  %v608_v63 = vrot.slane %v2882_v47, 1  ;;  %v2466_v6 = vld [vmem:[%s3265_s3 + $0x198] sm:$0xff]  ;;  %v2939_v32 = vpack.c.b16 %v535_v3, %v534_v43 }
  0x39   : > { %487 = vst [vmem:[#allocation2 + $0x3c] sm:$0x1] %v486_v0  ;;  %v2476_v5 = vld [vmem:[%s3265_s3 + $0x1e8] sm:$0xff]  ;;  %v948_v10 = vld [vmem:[#allocation2 + $0x24] sm:$0x1]  ;;  %v998_v19 = vshrl.u32 %v2870_v38, 16  ;;  %v264_v0 = vmul.f32 %v2647_v13, %v2502_v7  ;;  %v2951_v46 = vpack.c.b16 %v537_v8, %v536_v52 }
  0x3a   : > { %484 = vst [vmem:[#allocation2 + $0x38] sm:$0xf] %v483_v49  ;;  %1762 = vmatpush.bf16.msrb.mxu2 %v2467_v44  ;;  %v500_v53 = vld [vmem:[#allocation2 + $0x18] sm:$0xf]  ;;  %v2423_v11 = vld [vmem:[%s3265_s3 + $0x40] sm:$0xff]  ;;  %v1002_v21 = vrot.slane %v1000_v59, 1  ;;  %v619_v28 = vunpack.c.l.b16 %v608_v63  ;;  %1790 = vmatpush.bf16.msrb.mxu3 %v2476_v5  ;;  %v980_v34 = vunpack.c.l.b16 %v948_v10 }
  0x3b   : > { %v2890_v54 = vld [vmem:[#allocation2 + $0x18] sm:$0xf]  ;;  %v532_v57 = vunpack.c.l.b16 %v500_v53  ;;  %v1009_v23 = vrot.slane %v1007_v60, 1  ;;  %v560_v30 = vshll.u32 %v2816_v41, 16  ;;  %v551_v37 = vshrl.u32 %v2749_v40, 16  ;;  %v2461_v50 = vld [vmem:[%s3265_s3 + $0x170] sm:$0xff] }
  0x3c   : > { %1327 = vmatpush.bf16.msrb.mxu0 %v2450_v12  ;;  %879 = vmatpush.bf16.msrb.mxu1 %v2426_v25  ;;  %v501_v56 = vld [vmem:[#allocation2 + $0x1c] sm:$0x1]  ;;  %v977_v1 = vunpack.c.l.b16 %v2890_v54  ;;  %v2447_v12 = vld [vmem:[%s3265_s3 + $0x100] sm:$0xff]  ;;  %v555_v44 = vrot.slane %v553_v16, 1  ;;  %v1003_v42 = vor.u32 %v1002_v21, %v998_v19  ;;  %v558_v40 = vshrl.u32 %v2816_v41, 16  ;;  %v2465_v41 = vld [vmem:[%s3265_s3 + $0x190] sm:$0xff] }
  0x3d   : > { %v533_v61 = vunpack.c.l.b16 %v501_v56  ;;  %v2900_v62 = vld [vmem:[#allocation2 + $0x30] sm:$0xf]  ;;  %v681_v4 = vpack.c.b16 %v532_v57, %v530_v22  ;;  %v946_v20 = vld [vmem:[#allocation2 + $0x1c] sm:$0x1]  ;;  %v1005_v22 = vshrl.u32 %v2872_v39, 16  ;;  %v562_v13 = vrot.slane %v560_v30, 1 }
  0x3e   : > { %v538_v45 = vunpack.c.l.b16 %v2900_v62  ;;  %v2928_v25 = vld [vmem:[%s3265_s3 + $0x238] sm:$0xff]  ;;  %v1129_v29 = vpack.c.b16 %v979_v2, %v977_v1  ;;  %1763 = vmatpush.bf16.msrb.mxu2 %v2466_v6  ;;  %v2475_v51 = vld [vmem:[%s3265_s3 + $0x1e0] sm:$0xff]  ;;  %v2962_v52 = vpack.c.b16 %v980_v34, %v979_v2  ;;  %v2970_v54 = vld [vmem:[%s3265_s3 + $0x230] sm:$0xff]  ;;  %v1061_v56 = vunpack.c.l.b16 %v1003_v42 }
  0x3f   : > { %v2913_v9 = vpack.c.b16 %v533_v61, %v532_v57  ;;  %859 = vmatmul.bf16.gmra.mxu0 %v681_v4  ;;  %v2462_v31 = vld [vmem:[%s3265_s3 + $0x178] sm:$0xff]  ;;  %v1010_v43 = vor.u32 %v1009_v23, %v1005_v22  ;;  %v317_v53 = vld [vmem:[#allocation2 + $0x40] sm:$0x1]  ;;  %1791 = vmatpush.bf16.msrb.mxu3 %v2475_v51  ;;  %v276_v59 = vadd.f32 %v2652_v14, %v264_v0  ;;  %v349_v60 = vld [vmem:[#allocation2 + $0x44] sm:$0x1]  ;;  %v611_v2 = vrot.slane %v2951_v46, 1 }
  0x40   : > { %1328 = vmatpush.bf16.msrb.mxu0 %v2449_v36  ;;  %880 = vmatpush.bf16.msrb.mxu1 %v2425_v17  ;;  %v978_v36 = vunpack.c.l.b16 %v946_v20  ;;  %v2474_v61 = vld [vmem:[%s3265_s3 + $0x1d8] sm:$0xff]  ;;  %v563_v63 = vor.u32 %v562_v13, %v558_v40  ;;  %v2980_v3 = vld [vmem:[#allocation2 + $0x30] sm:$0xf]  ;;  %v2460_v4 = vld [vmem:[%s3265_s3 + $0x168] sm:$0xff]  ;;  %v318_v14 = vsel %vm2661_vm3, 0, %v317_v53  ;;  %v1021_v10 = vshll.u32 %v2962_v52, 16 }
  0x41   : > { %v2930_v26 = vld [vmem:[#allocation2 + $0x38] sm:$0xf]  ;;  %v609_v27 = vrot.slane %v2913_v9, 1  ;;  %v1063_v57 = vunpack.c.l.b16 %v1010_v43  ;;  %v284_v5 = vmax.f32 %v276_v59, 0.0  ;;  %319 = vst [vmem:[#allocation2 + $0x40] sm:$0x1] %v318_v14 }
  0x42   : > { %v540_v33 = vunpack.c.l.b16 %v2930_v26  ;;  %v2960_v48 = vpack.c.b16 %v978_v36, %v977_v1  ;;  %v610_v1 = vrot.slane %v2939_v32, 1  ;;  %1764 = vmatpush.bf16.msrb.mxu2 %v2465_v41  ;;  %v2464_v6 = vld [vmem:[%s3265_s3 + $0x188] sm:$0xff]  ;;  %v2473_v21 = vld [vmem:[%s3265_s3 + $0x1d0] sm:$0xff]  ;;  %v616_v23 = vunpack.c.l.b16 %v563_v63  ;;  %v2459_v30 = vld [vmem:[%s3265_s3 + $0x160] sm:$0xff] }
  0x43   : > { %v621_v35 = vunpack.c.l.b16 %v609_v27  ;;  %v2994_v7 = vld [vmem:[%s3265_s3 + $0x228] sm:$0xff]  ;;  %v1127_v16 = vpack.c.b16 %v1063_v57, %v1061_v56  ;;  %v362_v20 = vpack.c.bf16 %v284_v5, %v284_v5  ;;  %1792 = vmatpush.bf16.msrb.mxu3 %v2474_v61  ;;  %v507_v22 = vld [vmem:[#allocation2 + $0x34] sm:$0x1]  ;;  %v574_v57 = vshll.u32 %v2913_v9, 16  ;;  %v1409_v15 = vld [vmem:[#allocation2 + $0x1c] sm:$0x1] }
  0x44   : > { %1329 = vmatpush.bf16.msrb.mxu0 %v2448_v55  ;;  %881 = vmatpush.bf16.msrb.mxu1 %v2424_v58  ;;  %v687_v17 = vpack.c.b16 %v540_v33, %v538_v45  ;;  %v556_v55 = vor.u32 %v555_v44, %v551_v37  ;;  %v2972_v58 = vld [vmem:[#allocation2 + $0x28] sm:$0xf]  ;;  %v1014_v8 = vshll.u32 %v2960_v48, 16  ;;  %v623_v27 = vunpack.c.l.b16 %v610_v1  ;;  %v950_v36 = vld [vmem:[#allocation2 + $0x2c] sm:$0x1]  ;;  %v2463_v62 = vld [vmem:[%s3265_s3 + $0x180] sm:$0xff] }
  0x45   : > { %v683_v49 = vpack.c.b16 %v621_v35, %v619_v28  ;;  %1307 = vmatmul.bf16.gmra.mxu3 %v1129_v29  ;;  %v981_v19 = vunpack.c.l.b16 %v2972_v58  ;;  %v625_v28 = vunpack.c.l.b16 %v611_v2  ;;  %v983_v29 = vunpack.c.l.b16 %v2980_v3  ;;  %v952_v43 = vld [vmem:[#allocation2 + $0x34] sm:$0x1]  ;;  %v2472_v13 = vld [vmem:[%s3265_s3 + $0x1c8] sm:$0xff] }
  0x46   : > { %869 = vmatmul.bf16.gmra.mxu1 %v687_v17  ;;  %1765 = vmatpush.bf16.msrb.mxu2 %v2464_v6  ;;  %v420_v34 = vshrl.u32 %v362_v20, 16  ;;  %v423_v35 = vshll.u32 %v362_v20, 16  ;;  %v1012_v37 = vshrl.u32 %v2960_v48, 16  ;;  %v1016_v0 = vrot.slane %v1014_v8, 1  ;;  %v3024_v8 = vld [vmem:[#allocation2 + $0x10] sm:$0xf] }
  0x47   : > { %917 = vmatmul.bf16.gmra.mxu2 %v683_v49  ;;  %v1019_v17 = vshrl.u32 %v2962_v52, 16  ;;  %v1023_v44 = vrot.slane %v1021_v10, 1  ;;  %v539_v42 = vunpack.c.l.b16 %v507_v22  ;;  %v567_v49 = vshll.u32 %v2882_v47, 16  ;;  %1793 = vmatpush.bf16.msrb.mxu3 %v2473_v21  ;;  %v1407_v10 = vld [vmem:[#allocation2 + $0x14] sm:$0x1]  ;;  %v3054_v22 = vld [vmem:[%s3265_s3 + $0x220] sm:$0xff] }
  0x48   : > { %1330 = vmatpush.bf16.msrb.mxu0 %v2447_v12  ;;  %882 = vmatpush.bf16.msrb.mxu1 %v2423_v11  ;;  %v350_v11 = vsel %vm2672_vm4, 0, %v349_v60  ;;  %v614_v12 = vunpack.c.l.b16 %v556_v55  ;;  %v422_v40 = vrot.slane %v420_v34, 7  ;;  %v686_v53 = vpack.c.b16 %v625_v28, %v623_v27  ;;  %v488_v55 = vld [vmem:[#allocation2 + $0x40] sm:$0xf]  ;;  %v2457_v58 = vld [vmem:[%s3265_s3 + $0x150] sm:$0xff] }
  0x49   : > { %351 = vst [vmem:[#allocation2 + $0x44] sm:$0x1] %v350_v11  ;;  %v1132_v41 = vpack.c.b16 %v983_v29, %v981_v19  ;;  %v982_v56 = vunpack.c.l.b16 %v950_v36  ;;  %v984_v61 = vunpack.c.l.b16 %v952_v43  ;;  %v565_v63 = vshrl.u32 %v2882_v47, 16  ;;  %v953_v36 = vld [vmem:[#allocation2 + $0x38] sm:$0xf] }
  0x4a   : > { %v679_v51 = vpack.c.b16 %v616_v23, %v614_v12  ;;  %v425_v59 = vor.u32 %v423_v35, %v422_v40  ;;  %v426_v60 = vrot.slane %v422_v40, 4  ;;  %v1017_v1 = vor.u32 %v1016_v0, %v1012_v37  ;;  %1766 = vmatpush.bf16.msrb.mxu2 %v2463_v62  ;;  %v3091_v62 = vld [vmem:[#allocation2 + $0x20] sm:$0xf] }
  0x4b   : > { %v1024_v2 = vor.u32 %v1023_v44, %v1019_v17  ;;  %v572_v14 = vshrl.u32 %v2913_v9, 16  ;;  %1794 = vmatpush.bf16.msrb.mxu3 %v2472_v13  ;;  %v3028_v11 = vpack.c.b16 %v539_v42, %v538_v45  ;;  %v3034_v9 = vld [vmem:[#allocation2 + $0x18] sm:$0xf]  ;;  %v576_v12 = vrot.slane %v574_v57, 1  ;;  %v2471_v45 = vld [vmem:[%s3265_s3 + $0x1c0] sm:$0xff] }
  0x4c   : > { %1817 = vmatpush.bf16.msra.mxu0 %v2928_v25  ;;  %1352 = vmatpush.bf16.msra.mxu1 %v2462_v31  ;;  %v509_v31 = vld [vmem:[#allocation2 + $0x3c] sm:$0x1]  ;;  %v489_v5 = vsel %vm2726_vm6, %v425_v59, %v488_v55  ;;  %v3047_v26 = vpack.c.b16 %v982_v56, %v981_v19  ;;  %v1065_v20 = vunpack.c.l.b16 %v1017_v1  ;;  %v1438_v23 = vunpack.c.l.b16 %v3024_v8 }
  0x4d   : > { %490 = vst [vmem:[#allocation2 + $0x40] sm:$0xf] %v489_v5  ;;  %v1067_v21 = vunpack.c.l.b16 %v1024_v2  ;;  %v1439_v27 = vunpack.c.l.b16 %v1407_v10  ;;  %v1440_v28 = vunpack.c.l.b16 %v3034_v9  ;;  %v612_v19 = vrot.slane %v3028_v11, 1  ;;  %v3151_v9 = vld [vmem:[#allocation2 + $0x30] sm:$0xf] }
  0x4e   : > { %v577_v35 = vor.u32 %v576_v12, %v572_v14  ;;  %2537 = vmatpush.bf16.msra.mxu2 %v2928_v25  ;;  %v1028_v37 = vshll.u32 %v3047_v26, 16  ;;  %v985_v13 = vunpack.c.l.b16 %v953_v36  ;;  %v588_v55 = vshll.u32 %v2951_v46, 16 }
  0x4f   : > { %1331 = vmatmul.bf16.vlgmr.msrb.gmra.mxu0 %v1127_v16  ;;  %v2458_v16 = vld [vmem:[%s3265_s3 + $0x158] sm:$0xff]  ;;  %1795 = vmatpush.bf16.msrb.mxu3 %v2471_v45  ;;  %v1130_v17 = vpack.c.b16 %v1067_v21, %v1065_v20  ;;  %v3074_v42 = vpack.c.b16 %v1439_v27, %v1438_v23  ;;  %v1026_v56 = vshrl.u32 %v3047_v26, 16  ;;  %v1446_v18 = vunpack.c.l.b16 %v3151_v9 }
  0x50   : > { %1353 = vmatpush.bf16.msra.mxu1 %v2461_v50  ;;  %1818 = vmatpush.bf16.msra.mxu0 %v2970_v54  ;;  %v541_v50 = vunpack.c.l.b16 %v509_v31  ;;  %v491_v3 = vld [vmem:[#allocation2 + $0x44] sm:$0x1]  ;;  %v3067_v31 = vld [vmem:[%s3265_s3 + $0x218] sm:$0xff]  ;;  %v1030_v57 = vrot.slane %v1028_v37, 1 }
  0x51   : > { %v492_v6 = vsel %vm2661_vm3, %v426_v60, %v491_v3  ;;  %v1463_v45 = vshrl.u32 %v3074_v42, 16 }
  0x52   : > { %v3032_v47 = vpack.c.b16 %v541_v50, %v540_v33  ;;  %493 = vst [vmem:[#allocation2 + $0x44] sm:$0x1] %v492_v6  ;;  %v3049_v33 = vpack.c.b16 %v984_v61, %v983_v29  ;;  %2538 = vmatpush.bf16.msra.mxu2 %v2970_v54  ;;  %v586_v54 = vshrl.u32 %v2951_v46, 16  ;;  %v590_v6 = vrot.slane %v588_v55, 1 }
  0x53   : > { %v1031_v12 = vor.u32 %v1030_v57, %v1026_v56 }
  0x54   : > { %1354 = vmatpush.bf16.msra.mxu1 %v2460_v4  ;;  %1819 = vmatpush.bf16.msra.mxu0 %v2994_v7  ;;  %v569_v4 = vrot.slane %v567_v49, 1  ;;  %v613_v29 = vrot.slane %v3032_v47, 1  ;;  %v1035_v0 = vshll.u32 %v3049_v33, 16  ;;  %v955_v44 = vld [vmem:[#allocation2 + $0x40] sm:$0xf]  ;;  %v627_v49 = vunpack.c.l.b16 %v612_v19  ;;  %v2456_v19 = vld [vmem:[%s3265_s3 + $0x148] sm:$0xff] }
  0x55   : > { %1312 = vmatmul.bf16.gmra.mxu3 %v1132_v41  ;;  %v987_v50 = vunpack.c.l.b16 %v955_v44  ;;  %v581_v41 = vshll.u32 %v2939_v32, 16  ;;  %v1033_v59 = vshrl.u32 %v3049_v33, 16  ;;  %v1069_v44 = vunpack.c.l.b16 %v1031_v12 }
  0x56   : > { %883 = vmatmul.bf16.vlgmr.msrb.gmra.mxu1 %v679_v51  ;;  %v570_v34 = vor.u32 %v569_v4, %v565_v63  ;;  %v629_v40 = vunpack.c.l.b16 %v613_v29  ;;  %v620_v51 = vunpack.c.l.b16 %v577_v35  ;;  %v1037_v60 = vrot.slane %v1035_v0, 1  ;;  %2539 = vmatpush.bf16.msra.mxu2 %v2994_v7  ;;  %v2481_v29 = vld [vmem:[%s3265_s3 + $0x210] sm:$0xff] }
  0x57   : > { %922 = vmatmul.bf16.gmra.mxu2 %v686_v53  ;;  %v954_v53 = vld [vmem:[#allocation2 + $0x3c] sm:$0x1]  ;;  %v1465_v63 = vshll.u32 %v3074_v42, 16  ;;  %v1135_v3 = vpack.c.b16 %v987_v50, %v985_v13  ;;  %v579_v4 = vshrl.u32 %v2939_v32, 16  ;;  %v583_v5 = vrot.slane %v581_v41, 1 }
  0x58   : > { %1355 = vmatpush.bf16.msra.mxu1 %v2459_v30  ;;  %v1441_v30 = vunpack.c.l.b16 %v1409_v15  ;;  %1820 = vmatpush.bf16.msra.mxu0 %v3054_v22  ;;  %v618_v25 = vunpack.c.l.b16 %v570_v34  ;;  %v986_v2 = vunpack.c.l.b16 %v954_v53  ;;  %v689_v10 = vpack.c.b16 %v629_v40, %v627_v49  ;;  %v1411_v32 = vld [vmem:[#allocation2 + $0x24] sm:$0x1]  ;;  %v1413_v34 = vld [vmem:[#allocation2 + $0x2c] sm:$0x1] }
  0x59   : > { %v956_v61 = vld [vmem:[#allocation2 + $0x44] sm:$0x1]  ;;  %v1467_v20 = vrot.slane %v1465_v63, 1  ;;  %v584_v7 = vor.u32 %v583_v5, %v579_v4  ;;  %v1442_v35 = vunpack.c.l.b16 %v3091_v62  ;;  %v1443_v37 = vunpack.c.l.b16 %v1411_v32 }
  0x5a   : > { %v3078_v43 = vpack.c.b16 %v1441_v30, %v1440_v28  ;;  %v682_v14 = vpack.c.b16 %v620_v51, %v618_v25  ;;  %v988_v15 = vunpack.c.l.b16 %v956_v61  ;;  %v3095_v30 = vld [vmem:[#allocation2 + $0x28] sm:$0xf]  ;;  %v3097_v46 = vpack.c.b16 %v986_v2, %v985_v13  ;;  %2540 = vmatpush.bf16.msra.mxu2 %v3054_v22  ;;  %v2455_v25 = vld [vmem:[%s3265_s3 + $0x140] sm:$0xff] }
  0x5b   : > { %v1053_v0 = vrot.slane %v2870_v38, 1  ;;  %v1468_v40 = vor.u32 %v1467_v20, %v1463_v45  ;;  %v2480_v22 = vld [vmem:[%s3265_s3 + $0x208] sm:$0xff]  ;;  %v1445_v51 = vunpack.c.l.b16 %v1413_v34  ;;  %v3127_v55 = vpack.c.b16 %v1443_v37, %v1442_v35 }
  0x5c   : > { %1356 = vmatpush.bf16.msra.mxu1 %v2458_v16  ;;  %1821 = vmatpush.bf16.msra.mxu0 %v3067_v31  ;;  %v1472_v1 = vshll.u32 %v3078_v43, 16  ;;  %v1038_v16 = vor.u32 %v1037_v60, %v1033_v59  ;;  %v1470_v21 = vshrl.u32 %v3078_v43, 16  ;;  %v3107_v36 = vpack.c.b16 %v988_v15, %v987_v50 }
  0x5d   : > { %v1444_v50 = vunpack.c.l.b16 %v3095_v30  ;;  %v3118_v38 = vunpack.c.l.b16 %v1053_v0  ;;  %v1042_v53 = vshll.u32 %v3097_v46, 16  ;;  %v622_v57 = vunpack.c.l.b16 %v584_v7  ;;  %v320_v7 = vld [vmem:[#allocation2 + $0x48] sm:$0x1] }
  0x5e   : > { %v1474_v27 = vrot.slane %v1472_v1, 1  ;;  %v1071_v49 = vunpack.c.l.b16 %v1038_v16  ;;  %2541 = vmatpush.bf16.msra.mxu2 %v3067_v31  ;;  %v1049_v41 = vshll.u32 %v3107_v36, 16  ;;  %v1526_v61 = vunpack.c.l.b16 %v1468_v40  ;;  %v2479_v31 = vld [vmem:[%s3265_s3 + $0x200] sm:$0xff] }
  0x5f   : > { %1336 = vmatmul.bf16.gmra.mxu0 %v1130_v17  ;;  %v1054_v17 = vrot.slane %v2872_v39, 1  ;;  %v3133_v1 = vpack.c.b16 %v1445_v51, %v1444_v50  ;;  %v1040_v2 = vshrl.u32 %v3097_v46, 16  ;;  %v1047_v4 = vshrl.u32 %v3107_v36, 16 }
  0x60   : > { %1357 = vmatpush.bf16.msra.mxu1 %v2457_v58  ;;  %v591_v58 = vor.u32 %v590_v6, %v586_v54  ;;  %v1475_v13 = vor.u32 %v1474_v27, %v1470_v21  ;;  %1822 = vmatpush.bf16.msra.mxu0 %v2481_v29  ;;  %v1133_v59 = vpack.c.b16 %v1071_v49, %v1069_v44  ;;  %v1479_v5 = vshll.u32 %v3127_v55, 16 }
  0x61   : > { %v3120_v39 = vunpack.c.l.b16 %v1054_v17  ;;  %v1591_v6 = vpack.c.b16 %v1440_v28, %v1438_v23  ;;  %v1486_v15 = vshll.u32 %v3133_v1, 16  ;;  %v593_v12 = vshrl.u32 %v3028_v11, 16  ;;  %v1415_v23 = vld [vmem:[#allocation2 + $0x34] sm:$0x1]  ;;  %v3153_v28 = vld [vmem:[#allocation2 + $0x38] sm:$0xf] }
  0x62   : > { %v624_v60 = vunpack.c.l.b16 %v591_v58  ;;  %v1528_v63 = vunpack.c.l.b16 %v1475_v13  ;;  %2542 = vmatpush.bf16.msra.mxu2 %v2481_v29  ;;  %v595_v16 = vshll.u32 %v3028_v11, 16  ;;  %v602_v45 = vshll.u32 %v3032_v47, 16  ;;  %v352_v29 = vld [vmem:[#allocation2 + $0x4c] sm:$0x1] }
  0x63   : > { %v1128_v56 = vpack.c.b16 %v3120_v39, %v3118_v38  ;;  %v1477_v27 = vshrl.u32 %v3127_v55, 16  ;;  %v1481_v32 = vrot.slane %v1479_v5, 1  ;;  %v1484_v8 = vshrl.u32 %v3133_v1, 16 }
  0x64   : > { %1358 = vmatpush.bf16.msra.mxu1 %v2456_v19  ;;  %1823 = vmatpush.bf16.msra.mxu0 %v2480_v22  ;;  %v685_v54 = vpack.c.b16 %v624_v60, %v622_v57  ;;  %v1488_v58 = vrot.slane %v1486_v15, 1  ;;  %v1417_v19 = vld [vmem:[#allocation2 + $0x3c] sm:$0x1]  ;;  %v321_v11 = vsel %vm2661_vm3, 0, %v320_v7  ;;  %v597_v34 = vrot.slane %v595_v16, 1 }
  0x65   : > { %1317 = vmatmul.bf16.gmra.mxu3 %v1135_v3  ;;  %v1044_v3 = vrot.slane %v1042_v53, 1  ;;  %v600_v37 = vshrl.u32 %v3032_v47, 16  ;;  %v604_v0 = vrot.slane %v602_v45, 1  ;;  %322 = vst [vmem:[#allocation2 + $0x48] sm:$0x1] %v321_v11  ;;  %v353_v17 = vsel %vm2672_vm4, 0, %v352_v29 }
  0x66   : > { %888 = vmatmul.bf16.gmra.mxu1 %v682_v14  ;;  %v1051_v14 = vrot.slane %v1049_v41, 1  ;;  %2543 = vmatpush.bf16.msra.mxu2 %v2480_v22  ;;  %v1055_v40 = vrot.slane %v2960_v48, 1  ;;  %v1056_v13 = vrot.slane %v2962_v52, 1  ;;  %354 = vst [vmem:[#allocation2 + $0x4c] sm:$0x1] %v353_v17  ;;  %v1448_v22 = vunpack.c.l.b16 %v3153_v28 }
  0x67   : > { %927 = vmatmul.bf16.gmra.mxu2 %v689_v10  ;;  %v1592_v10 = vpack.c.b16 %v1528_v63, %v1526_v61  ;;  %v1045_v20 = vor.u32 %v1044_v3, %v1040_v2  ;;  %v1449_v47 = vunpack.c.l.b16 %v1417_v19  ;;  %v1482_v51 = vor.u32 %v1481_v32, %v1477_v27  ;;  %v1419_v27 = vld [vmem:[#allocation2 + $0x44] sm:$0x1] }
  0x68   : > { %1359 = vmatpush.bf16.msra.mxu1 %v2455_v25  ;;  %1824 = vmatpush.bf16.msra.mxu0 %v2479_v31  ;;  %v1052_v21 = vor.u32 %v1051_v14, %v1047_v4  ;;  %v1447_v25 = vunpack.c.l.b16 %v1415_v23  ;;  %v1489_v53 = vor.u32 %v1488_v58, %v1484_v8  ;;  %v3164_v41 = vunpack.c.l.b16 %v1055_v40 }
  0x69   : > { %v1073_v44 = vunpack.c.l.b16 %v1045_v20  ;;  %v3166_v24 = vunpack.c.l.b16 %v1056_v13  ;;  %v598_v57 = vor.u32 %v597_v34, %v593_v12  ;;  %v3172_v61 = vpack.c.b16 %v1449_v47, %v1448_v22 }
  0x6a   : > { %2544 = vmatpush.bf16.msra.mxu2 %v2479_v31  ;;  %v1075_v49 = vunpack.c.l.b16 %v1052_v21  ;;  %v3170_v52 = vpack.c.b16 %v1447_v25, %v1446_v18  ;;  %v1530_v63 = vunpack.c.l.b16 %v1482_v51  ;;  %v1532_v31 = vunpack.c.l.b16 %v1489_v53  ;;  %v1418_v21 = vld [vmem:[#allocation2 + $0x40] sm:$0xf] }
  0x6b   : > { %v1131_v48 = vpack.c.b16 %v3166_v24, %v3164_v41  ;;  %v626_v2 = vunpack.c.l.b16 %v598_v57  ;;  %v1500_v14 = vshll.u32 %v3172_v61, 16  ;;  %v1519_v15 = vrot.slane %v3078_v43, 1 }
  0x6c   : > { %v1136_v60 = vpack.c.b16 %v1075_v49, %v1073_v44  ;;  %v1493_v4 = vshll.u32 %v3170_v52, 16  ;;  %v1595_v5 = vpack.c.b16 %v1532_v31, %v1530_v63  ;;  %v1491_v12 = vshrl.u32 %v3170_v52, 16  ;;  %v1420_v32 = vld [vmem:[#allocation2 + $0x48] sm:$0xf] }
  0x6d   : > { %v1498_v45 = vshrl.u32 %v3172_v61, 16  ;;  %v1502_v20 = vrot.slane %v1500_v14, 1  ;;  %v1421_v8 = vld [vmem:[#allocation2 + $0x4c] sm:$0x1]  ;;  %v1529_v30 = vunpack.c.l.b16 %v1519_v15  ;;  %v1451_v9 = vunpack.c.l.b16 %v1419_v27 }
  0x6e   : > { %v1495_v16 = vrot.slane %v1493_v4, 1  ;;  %v1452_v43 = vunpack.c.l.b16 %v1420_v32  ;;  %v1453_v23 = vunpack.c.l.b16 %v1421_v8  ;;  %v1057_v29 = vrot.slane %v3047_v26, 1 }
  0x6f   : > { %1341 = vmatmul.bf16.gmra.mxu0 %v1133_v59  ;;  %v605_v59 = vor.u32 %v604_v0, %v600_v37  ;;  %v1058_v34 = vrot.slane %v3049_v33, 1  ;;  %v1597_v40 = vpack.c.b16 %v1448_v22, %v1446_v18  ;;  %v1520_v13 = vrot.slane %v3127_v55, 1 }
  0x70   : > { %v1461_v11 = vpack.c.b16 %v1453_v23, %v1452_v43  ;;  %v1070_v44 = vunpack.c.l.b16 %v1057_v29  ;;  %v1521_v25 = vrot.slane %v3133_v1, 1  ;;  %v1059_v41 = vrot.slane %v3097_v46, 1 }
  0x71   : > { %v628_v3 = vunpack.c.l.b16 %v605_v59  ;;  %v1072_v49 = vunpack.c.l.b16 %v1058_v34  ;;  %v1531_v26 = vunpack.c.l.b16 %v1520_v13  ;;  %v1060_v24 = vrot.slane %v3107_v36, 1 }
  0x72   : > { %v1514_v17 = vshll.u32 %v1461_v11, 16  ;;  %v1512_v57 = vshrl.u32 %v1461_v11, 16  ;;  %v1533_v33 = vunpack.c.l.b16 %v1521_v25  ;;  %v1525_v14 = vrot.slane %v1461_v11, 1 }
  0x73   : > { %v1134_v47 = vpack.c.b16 %v1072_v49, %v1070_v44 }
  0x74   : > { %v1516_v59 = vrot.slane %v1514_v17, 1  ;;  %v1596_v18 = vpack.c.b16 %v1533_v33, %v1531_v26 }
  0x75   : > { %1796 = vmatmul.bf16.vlgmr.msrb.gmra.mxu3 %v1592_v10  ;;  %v1518_v10 = vrot.slane %v3074_v42, 1  ;;  %v1450_v42 = vunpack.c.l.b16 %v1418_v21 }
  0x76   : > { %893 = vmatmul.bf16.gmra.mxu1 %v685_v54  ;;  %v688_v54 = vpack.c.b16 %v628_v3, %v626_v2  ;;  %v1517_v63 = vor.u32 %v1516_v59, %v1512_v57  ;;  %v1522_v2 = vrot.slane %v3170_v52, 1  ;;  %v1523_v3 = vrot.slane %v3172_v61, 1 }
  0x77   : > { %1767 = vmatmul.bf16.vlgmr.msrb.gmra.mxu2 %v1591_v6  ;;  %v1594_v6 = vpack.c.b16 %v1444_v50, %v1442_v35  ;;  %v1527_v62 = vunpack.c.l.b16 %v1518_v10  ;;  %v1496_v35 = vor.u32 %v1495_v16, %v1491_v12  ;;  %v1503_v50 = vor.u32 %v1502_v20, %v1498_v45 }
  0x78   : > { %v1460_v19 = vpack.c.b16 %v1451_v9, %v1450_v42  ;;  %v1540_v55 = vunpack.c.l.b16 %v1517_v63  ;;  %v1600_v31 = vpack.c.b16 %v1452_v43, %v1450_v42  ;;  %v1535_v38 = vunpack.c.l.b16 %v1522_v2 }
  0x79   : > { %v1593_v28 = vpack.c.b16 %v1529_v30, %v1527_v62  ;;  %v1534_v7 = vunpack.c.l.b16 %v1496_v35  ;;  %v1536_v58 = vunpack.c.l.b16 %v1503_v50  ;;  %v1537_v39 = vunpack.c.l.b16 %v1523_v3 }
  0x7a   : > { %v1507_v0 = vshll.u32 %v1460_v19, 16  ;;  %v1505_v51 = vshrl.u32 %v1460_v19, 16  ;;  %v1524_v4 = vrot.slane %v1460_v19, 1  ;;  %v1074_v45 = vunpack.c.l.b16 %v1059_v41 }
  0x7b   : > { %v1598_v37 = vpack.c.b16 %v1536_v58, %v1534_v7  ;;  %v1076_v20 = vunpack.c.l.b16 %v1060_v24 }
  0x7c   : > { %v1509_v53 = vrot.slane %v1507_v0, 1 }
  0x7d   : > { %v1137_v32 = vpack.c.b16 %v1076_v20, %v1074_v45 }
  0x7f   : > { %1346 = vmatmul.bf16.gmra.mxu0 %v1136_v60  ;;  %v1510_v60 = vor.u32 %v1509_v53, %v1505_v51 }
  0x81   : > { %v1538_v22 = vunpack.c.l.b16 %v1510_v60 }
  0x83   : > { %v1601_v1 = vpack.c.b16 %v1540_v55, %v1538_v22 }
  0x85   : > { %1801 = vmatmul.bf16.gmra.mxu3 %v1595_v5  ;;  %v1599_v5 = vpack.c.b16 %v1537_v39, %v1535_v38 }
  0x86   : > { %898 = vmatmul.bf16.gmra.mxu1 %v688_v54  ;;  %v1539_v54 = vunpack.c.l.b16 %v1524_v4 }
  0x87   : > { %1772 = vmatmul.bf16.gmra.mxu2 %v1594_v6  ;;  %v1541_v6 = vunpack.c.l.b16 %v1525_v14 }
  0x89   : > { %v1602_v52 = vpack.c.b16 %v1541_v6, %v1539_v54 }
  0x8f   : > { %1825 = vmatmul.bf16.vlgmr.msra.gmra.mxu0 %v1593_v28 }
  0x95   : > { %1806 = vmatmul.bf16.gmra.mxu3 %v1598_v37 }
  0x96   : > { %1360 = vmatmul.bf16.vlgmr.msra.gmra.mxu1 %v1128_v56 }
  0x97   : > { %1777 = vmatmul.bf16.gmra.mxu2 %v1597_v40 }
  0x9f   : > { %1830 = vmatmul.bf16.gmra.mxu0 %v1596_v18 }
  0xa5   : > { %1811 = vmatmul.bf16.gmra.mxu3 %v1601_v1 }
  0xa6   : > { %1365 = vmatmul.bf16.gmra.mxu1 %v1131_v48 }
  0xa7   : > { %1782 = vmatmul.bf16.gmra.mxu2 %v1600_v31 }
  0xaa   : > { %v855_v56 = vpop.f32.mrf.mxu0 }
  0xaf   : > { %v865_v10 = vpop.f32.mrf.mxu1  ;;  %1835 = vmatmul.bf16.gmra.mxu0 %v1599_v5 }
  0xb2   : > { %v857_v15 = vpop.f32.mrf.mxu0 }
  0xb6   : > { %1370 = vmatmul.bf16.gmra.mxu1 %v1134_v47 }
  0xb7   : > { %1840 = vmatmul.bf16.vlgmr.msra.gmra.mxu2 %v1602_v52  ;;  %v867_v16 = vpop.f32.mrf.mxu1 }
  0xb8   : > { %v913_v61 = vpop.f32.mrf.mxu2  ;;  %v1303_v12 = vpop.f32.mrf.mxu3 }
  0xbc   : > { %v860_v48 = vpop.f32.mrf.mxu0 }
  0xc0   : > { %v915_v21 = vpop.f32.mrf.mxu2  ;;  %v3198_v27 = vpop.f32.mrf.mxu3 }
  0xc3   : > { %v870_v8 = vpop.f32.mrf.mxu1 }
  0xc4   : > { %v862_v62 = vpop.f32.mrf.mxu0 }
  0xc6   : > { %1375 = vmatmul.bf16.gmra.mxu1 %v1137_v32 }
  0xc8   : > { %v1308_v30 = vpop.f32.mrf.mxu3 }
  0xca   : > { %v918_v35 = vpop.f32.mrf.mxu2 }
  0xcb   : > { %v872_v50 = vpop.f32.mrf.mxu1 }
  0xcc   : > { %v1332_v42 = vpop.f32.mrf.mxu0 }
  0xcd   : > { %v1333_v9 = vadd.f32 %v1332_v42, %v1303_v12 }
  0xd0   : > { %v3200_v43 = vpop.f32.mrf.mxu3 }
  0xd2   : > { %v920_v46 = vpop.f32.mrf.mxu2 }
  0xd3   : > { %v884_v23 = vpop.f32.mrf.mxu1 }
  0xd4   : > { %v885_v36 = vadd.f32 %v884_v23, %v855_v56  ;;  %v1334_v28 = vpop.f32.mrf.mxu0 }
  0xd6   : > { %v914_v7 = vadd.f32 %v913_v61, %v885_v36 }
  0xd8   : > { %v1313_v11 = vpop.f32.mrf.mxu3 }
  0xda   : > { %v923_v58 = vpop.f32.mrf.mxu2 }
  0xdb   : > { %v886_v19 = vpop.f32.mrf.mxu1 }
  0xdc   : > { %v887_v29 = vadd.f32 %v886_v19, %v857_v15  ;;  %v1337_v34 = vpop.f32.mrf.mxu0 }
  0xdd   : > { %v3202_v0 = vadd.f32 %v1337_v34, %v1308_v30 }
  0xde   : > { %v916_v37 = vadd.f32 %v915_v21, %v887_v29 }
  0xe0   : > { %v3204_v40 = vpop.f32.mrf.mxu3 }
  0xe2   : > { %v925_v17 = vpop.f32.mrf.mxu2 }
  0xe3   : > { %v889_v44 = vpop.f32.mrf.mxu1 }
  0xe4   : > { %v890_v49 = vadd.f32 %v889_v44, %v860_v48  ;;  %v3206_v13 = vpop.f32.mrf.mxu0 }
  0xe6   : > { %v919_v25 = vadd.f32 %v918_v35, %v890_v49 }
  0xe8   : > { %v1318_v33 = vpop.f32.mrf.mxu3 }
  0xea   : > { %v928_v47 = vpop.f32.mrf.mxu2 }
  0xeb   : > { %v891_v51 = vpop.f32.mrf.mxu1 }
  0xec   : > { %v892_v53 = vadd.f32 %v891_v51, %v862_v62  ;;  %v1342_v57 = vpop.f32.mrf.mxu0 }
  0xed   : > { %v3210_v26 = vadd.f32 %v1342_v57, %v1313_v11 }
  0xee   : > { %v3208_v59 = vadd.f32 %v920_v46, %v892_v53 }
  0xf0   : > { %v3216_v1 = vpop.f32.mrf.mxu3 }
  0xf2   : > { %v930_v60 = vpop.f32.mrf.mxu2 }
  0xf3   : > { %v894_v63 = vpop.f32.mrf.mxu1 }
  0xf4   : > { %v895_v18 = vadd.f32 %v894_v63, %v865_v10  ;;  %v3212_v22 = vpop.f32.mrf.mxu0 }
  0xf6   : > { %v3214_v55 = vadd.f32 %v923_v58, %v895_v18 }
  0xf8   : > { %v1797_v14 = vpop.f32.mrf.mxu3 }
  0xfa   : > { %v1768_v31 = vpop.f32.mrf.mxu2 }
  0xfb   : > { %v896_v2 = vpop.f32.mrf.mxu1  ;;  %v1798_v62 = vadd.f32 %v1797_v14, %v1768_v31 }
  0xfc   : > { %v897_v3 = vadd.f32 %v896_v2, %v867_v16  ;;  %v1347_v38 = vpop.f32.mrf.mxu0 }
  0xfd   : > { %v3220_v56 = vadd.f32 %v1347_v38, %v1318_v33  ;;  %v1340_v33 = vadd.f32 %v3206_v13, %v3200_v43 }
  0xfe   : > { %v3218_v39 = vadd.f32 %v925_v17, %v897_v3 }
 0x100   : > { %v1799_v12 = vpop.f32.mrf.mxu3 }
 0x102   : > { %v1770_v4 = vpop.f32.mrf.mxu2 }
 0x103   : > { %v899_v5 = vpop.f32.mrf.mxu1  ;;  %v1800_v42 = vadd.f32 %v1799_v12, %v1770_v4 }
 0x104   : > { %v900_v54 = vadd.f32 %v899_v5, %v870_v8  ;;  %v3222_v6 = vpop.f32.mrf.mxu0  ;;  %v1335_v8 = vadd.f32 %v1334_v28, %v3198_v27 }
 0x106   : > { %v3224_v10 = vadd.f32 %v928_v47, %v900_v54 }
 0x108   : > { %v1802_v32 = vpop.f32.mrf.mxu3 }
 0x10a   : > { %v1773_v15 = vpop.f32.mrf.mxu2 }
 0x10b   : > { %v901_v52 = vpop.f32.mrf.mxu1  ;;  %v1803_v44 = vadd.f32 %v1802_v32, %v1773_v15 }
 0x10c   : > { %v902_v61 = vadd.f32 %v901_v52, %v872_v50  ;;  %v1826_v41 = vpop.f32.mrf.mxu0 }
 0x10d   : > { %v1827_v46 = vadd.f32 %v1826_v41, %v1798_v62 }
 0x10e   : > { %v3226_v24 = vadd.f32 %v930_v60, %v902_v61 }
 0x110   : > { %v1804_v29 = vpop.f32.mrf.mxu3 }
 0x112   : > { %v1775_v16 = vpop.f32.mrf.mxu2 }
 0x113   : > { %v1361_v48 = vpop.f32.mrf.mxu1  ;;  %v1805_v2 = vadd.f32 %v1804_v29, %v1775_v16 }
 0x114   : > { %v1362_v45 = vadd.f32 %v1361_v48, %v1333_v9  ;;  %v1828_v20 = vpop.f32.mrf.mxu0 }
 0x115   : > { %v1829_v19 = vadd.f32 %v1828_v20, %v1800_v42 }
 0x116   : > { %v1389_v21 = vadd.f32 %v1362_v45, %v914_v7 }
 0x118   : > { %v1854_v36 = vadd.f32 %v1827_v46, %v1389_v21  ;;  %v1807_v18 = vpop.f32.mrf.mxu3 }
 0x11a   : > { %v1778_v30 = vpop.f32.mrf.mxu2  ;;  %v1907_v27 = vmul.f32 %v1854_v36, %v1854_v36 }
 0x11b   : > { %v1363_v35 = vpop.f32.mrf.mxu1  ;;  %v1808_v12 = vadd.f32 %v1807_v18, %v1778_v30 }
 0x11c   : > { %v1364_v23 = vadd.f32 %v1363_v35, %v1335_v8  ;;  %v1831_v50 = vpop.f32.mrf.mxu0 }
 0x11d   : > { %v1832_v51 = vadd.f32 %v1831_v50, %v1803_v44 }
 0x11e   : > { %v1390_v58 = vadd.f32 %v1364_v23, %v916_v37 }
 0x120   : > { %v1855_v11 = vadd.f32 %v1829_v19, %v1390_v58  ;;  %v1809_v41 = vpop.f32.mrf.mxu3 }
 0x122   : > { %v2506_v9 = vpack.c.bf16 %v1855_v11, %v1854_v36  ;;  %v1894_v28 = vadd.f32 %v1855_v11, %v1854_v36  ;;  %v1908_v7 = vmul.f32 %v1855_v11, %v1855_v11  ;;  %v1780_v17 = vpop.f32.mrf.mxu2 }
 0x123   : > { %v1366_v34 = vpop.f32.mrf.mxu1  ;;  %v1810_v35 = vadd.f32 %v1809_v41, %v1780_v17 }
 0x124   : > { %2507 = vst [vmem:[%s3234_s20] sm:$0xff] %v2506_v9   ;;  %v1915_v49 = vadd.f32 %v1908_v7, %v1907_v27  ;;  %v1367_v37 = vadd.f32 %v1366_v34, %v3202_v0  ;;  %v1833_v53 = vpop.f32.mrf.mxu0 }
 0x125   : > { %v1834_v5 = vadd.f32 %v1833_v53, %v1805_v2 }
 0x126   : > { %v1391_v47 = vadd.f32 %v1367_v37, %v919_v25 }
 0x128   : > { %v1856_v57 = vadd.f32 %v1832_v51, %v1391_v47  ;;  %v1812_v23 = vpop.f32.mrf.mxu3 }
 0x12a   : > { %v1895_v60 = vadd.f32 %v1894_v28, %v1856_v57  ;;  %v1909_v63 = vmul.f32 %v1856_v57, %v1856_v57  ;;  %v1783_v4 = vpop.f32.mrf.mxu2 }
 0x12b   : > { %v1368_v31 = vpop.f32.mrf.mxu1  ;;  %v1813_v29 = vadd.f32 %v1812_v23, %v1783_v4 }
 0x12c   : > { %v1916_v3 = vadd.f32 %v1915_v49, %v1909_v63  ;;  %v1369_v38 = vadd.f32 %v1368_v31, %v1340_v33  ;;  %v1836_v25 = vpop.f32.mrf.mxu0 }
 0x12d   : > { %v1837_v48 = vadd.f32 %v1836_v25, %v1808_v12 }
 0x12e   : > { %v1392_v14 = vadd.f32 %v1369_v38, %v3208_v59  ;;  %v1345_v59 = vadd.f32 %v3212_v22, %v3204_v40 }
 0x130   : > { %v1857_v0 = vadd.f32 %v1834_v5, %v1392_v14  ;;  %v1814_v7 = vpop.f32.mrf.mxu3 }
 0x132   : > { %v2511_v54 = vpack.c.bf16 %v1857_v0, %v1856_v57  ;;  %v1896_v15 = vadd.f32 %v1895_v60, %v1857_v0  ;;  %v1910_v52 = vmul.f32 %v1857_v0, %v1857_v0  ;;  %v1785_v45 = vpop.f32.mrf.mxu2 }
 0x133   : > { %v1371_v61 = vpop.f32.mrf.mxu1  ;;  %v1815_v37 = vadd.f32 %v1814_v7, %v1785_v45 }
 0x134   : > { %2526 = vst [vmem:[%s3234_s20 + $0x8] sm:$0xff] %v2511_v54   ;;  %v1917_v43 = vadd.f32 %v1916_v3, %v1910_v52  ;;  %v1372_v13 = vadd.f32 %v1371_v61, %v3210_v26  ;;  %v1838_v62 = vpop.f32.mrf.mxu0 }
 0x135   : > { %v1839_v26 = vadd.f32 %v1838_v62, %v1810_v35 }
 0x136   : > { %v1393_v16 = vadd.f32 %v1372_v13, %v3214_v55 }
 0x138   : > { %v1858_v20 = vadd.f32 %v1837_v48, %v1393_v16 }
 0x13a   : > { %v1897_v21 = vadd.f32 %v1896_v15, %v1858_v20  ;;  %v1911_v32 = vmul.f32 %v1858_v20, %v1858_v20  ;;  %v1841_v55 = vpop.f32.mrf.mxu2 }
 0x13b   : > { %v1373_v8 = vpop.f32.mrf.mxu1  ;;  %v1842_v27 = vadd.f32 %v1841_v55, %v1813_v29 }
 0x13c   : > { %v1918_v30 = vadd.f32 %v1917_v43, %v1911_v32  ;;  %v1374_v42 = vadd.f32 %v1373_v8, %v1345_v59 }
 0x13e   : > { %v1394_v46 = vadd.f32 %v1374_v42, %v3218_v39  ;;  %v1350_v39 = vadd.f32 %v3222_v6, %v3216_v1 }
 0x140   : > { %v1859_v50 = vadd.f32 %v1839_v26, %v1394_v46 }
 0x142   : > { %v2516_v36 = vpack.c.bf16 %v1859_v50, %v1858_v20  ;;  %v1898_v58 = vadd.f32 %v1897_v21, %v1859_v50  ;;  %v1912_v19 = vmul.f32 %v1859_v50, %v1859_v50  ;;  %v1843_v44 = vpop.f32.mrf.mxu2 }
 0x143   : > { %v1376_v11 = vpop.f32.mrf.mxu1  ;;  %v1844_v53 = vadd.f32 %v1843_v44, %v1815_v37 }
 0x144   : > { %2527 = vst [vmem:[%s3234_s20 + $0x10] sm:$0xff] %v2516_v36   ;;  %v1919_v40 = vadd.f32 %v1918_v30, %v1912_v19  ;;  %v1377_v22 = vadd.f32 %v1376_v11, %v3220_v56 }
 0x146   : > { %v1395_v9 = vadd.f32 %v1377_v22, %v3224_v10 }
 0x148   : > { %v1860_v28 = vadd.f32 %v1842_v27, %v1395_v9 }
 0x14a   : > { %v1899_v34 = vadd.f32 %v1898_v58, %v1860_v28  ;;  %v1913_v17 = vmul.f32 %v1860_v28, %v1860_v28 }
 0x14b   : > { %v1378_v49 = vpop.f32.mrf.mxu1 }
 0x14c   : > { %v1920_v47 = vadd.f32 %v1919_v40, %v1913_v17  ;;  %v1379_v51 = vadd.f32 %v1378_v49, %v1350_v39 }
 0x14e   : > { %v1396_v57 = vadd.f32 %v1379_v51, %v3226_v24 }
 0x150   : > { %v1861_v56 = vadd.f32 %v1844_v53, %v1396_v57 }
 0x152   : > { %v2521_v33 = vpack.c.bf16 %v1861_v56, %v1860_v28  ;;  %v1900_v10 = vadd.f32 %v1899_v34, %v1861_v56  ;;  %v1914_v60 = vmul.f32 %v1861_v56, %v1861_v56 }
 0x154   : > { %2528 = vst [vmem:[%s3234_s20 + $0x18] sm:$0xff] %v2521_v33   ;;  %v1901_v63 = vrot.slane %v1900_v10, 4  ;;  %v1921_v18 = vadd.f32 %v1920_v47, %v1914_v60 }
 0x156   : > { %v1902_v31 = vadd.f32 %v1901_v63, %v1900_v10  ;;  %v1922_v1 = vrot.slane %v1921_v18, 4 }
 0x158   : > { %v1903_v6 = vrot.slane %v1902_v31, 2  ;;  %v1923_v2 = vadd.f32 %v1922_v1, %v1921_v18 }
 0x15a   : > { %v1904_v3 = vadd.f32 %v1903_v6, %v1902_v31  ;;  %v1924_v38 = vrot.slane %v1923_v2, 2 }
 0x15c   : > { %v1905_v4 = vrot.slane %v1904_v3, 1  ;;  %v1925_v14 = vadd.f32 %v1924_v38, %v1923_v2 }
 0x15e   : > { %v1926_v5 = vrot.slane %v1925_v14, 1  ;;  %v1906_v24 = vadd.f32 %v1905_v4, %v1904_v3 }
 0x160   : > { %v1927_v0 = vadd.f32 %v1926_v5, %v1925_v14 }
 0x162   : > { %v1929_v25 = vsel %vm290_vm0, %v1906_v24, %v1927_v0 }
 0x163   : > { %1930 = vst [vmem:[%s235_s23] sm:$0x3] %v1929_v25 }
 0x164 PF: > { %s16_s18 = sadd.s32 1, %s2562_s18  }
 0x165   : > { %p13_p4 = scmp.ge.s32.totalorder %s16_s18, 4  }
 0x167   :  { %15 = sbr.rel (!%p13_p4) target bundleno = 1 (0x1), region = 83 }

</bundles_post_ra>
